<compile_context>
chip_gen: v7x
topology: tpu7x:2x2x1
jax: 0.10.0
libtpu: 0.0.40
codegen_flags: <defaults>
</compile_context>

<pallas_src>
import functools
import math

import jax
import jax.numpy as jnp
from jax import lax
from jax.experimental import pallas as pl
from jax.experimental.pallas import tpu as pltpu


def _round_up(x, m):
    return ((x + m - 1) // m) * m


def _supcon_lse_kernel(a_ref, b_ref, lse_ref, m_ref, l_ref,
                       *, n_valid, block_m, block_n, dot_precision):
    i = pl.program_id(0)          # anchor (row) tile   -- "parallel"
    j = pl.program_id(1)          # contrast (col) tile -- "arbitrary" (online-LSE reduction)
    last_j = pl.num_programs(1) - 1

    @pl.when(j == 0)
    def _init():
        m_ref[...] = jnp.full(m_ref.shape, -jnp.inf, jnp.float32)
        l_ref[...] = jnp.zeros(l_ref.shape, jnp.float32)

    # (TM, dim) x (TN, dim)^T on the MXU: contract dim 1 of both operands (no
    # explicit transpose).  1/temperature is pre-folded into the anchor stream.
    logits = lax.dot_general(a_ref[...], b_ref[...], (((1,), (1,)), ((), ())),
                             preferred_element_type=jnp.float32,
                             precision=dot_precision)

    # Online-softmax running statistics, lane-replicated (TM, 128).
    m_prev = m_ref[...]
    row_max = jnp.max(logits, axis=1, keepdims=True)             # (TM, 1)
    m_new = jnp.maximum(m_prev, row_max)                         # (TM, 128), stays replicated
    alpha = jnp.exp(m_prev - m_new)                              # (TM, 128)
    shift = m_new[:, 0:1]                                        # (TM, 1)

    # Self pairs only live where the row/col index ranges overlap; padded columns
    # only exist in the last column tile.  The reference max includes the self
    # pair, so keeping it (and the zero-feature padded columns) in row_max is fine:
    # any shift cancels exactly in m + log(l).  Only the exp-sum must mask them.
    row_lo = i * block_m
    col_lo = j * block_n
    has_diag = jnp.logical_and(row_lo < col_lo + block_n, col_lo < row_lo + block_m)
    is_edge = jnp.logical_or(has_diag, j == last_j)

    @pl.when(jnp.logical_not(is_edge))
    def _interior():     # fast path: every column is a valid, non-self contrast sample
        p = jnp.exp(logits - shift)
        l_ref[...] = alpha * l_ref[...] + jnp.sum(p, axis=1, keepdims=True)

    @pl.when(is_edge)
    def _edge():         # mask the self-pair diagonal and the padded columns
        row_g = row_lo + lax.broadcasted_iota(jnp.int32, (block_m, 1), 0)
        col_g = col_lo + lax.broadcasted_iota(jnp.int32, (1, block_n), 1)
        contrib = jnp.logical_and(row_g != col_g, col_g < n_valid)
        p = jnp.where(contrib, jnp.exp(logits - shift), 0.0)
        l_ref[...] = alpha * l_ref[...] + jnp.sum(p, axis=1, keepdims=True)

    m_ref[...] = m_new

    @pl.when(j == last_j)
    def _finalize():
        lse_ref[...] = m_ref[:, 0:1] + jnp.log(l_ref[:, 0:1])


def supcon_loss(features, labels, temperature=0.07, base_temperature=0.07,
                block_m=512, block_n=512, mxu_dtype=jnp.bfloat16):
    """features: [bsz, n_views, dim]; labels: [bsz] int.  Returns scalar loss."""
    bsz, n_views, dim = features.shape
    n = bsz * n_views
    inv_temp = 1.0 / float(temperature)
    loss_scale = -(float(temperature) / float(base_temperature))

    # torch.cat(torch.unbind(features, dim=1), dim=0) -> view-major flatten
    cf = jnp.transpose(features, (1, 0, 2)).reshape(n, dim).astype(jnp.float32)
    lab = jnp.tile(labels.reshape(-1).astype(jnp.int32), n_views)

    # ---- positive-pair statistics (O(N*dim) XLA work, no N x N mask) -----------
    #   sum_j mask_ij * logits_ij = (a_i . S_{label_i} - a_i . a_i) / T
    #   cnt_i                     = |{j : label_j == label_i}| - 1
    _, inv = jnp.unique(lab, return_inverse=True, size=n)
    inv = jnp.reshape(inv, (-1,))
    class_sum = jax.ops.segment_sum(cf, inv, num_segments=n)                 # (n, dim)
    class_cnt = jax.ops.segment_sum(jnp.ones((n,), jnp.float32), inv, num_segments=n)
    pos_sum = (jnp.sum(cf * class_sum[inv], axis=1)
               - jnp.sum(cf * cf, axis=1)) * inv_temp                        # (n,)
    pos_cnt = class_cnt[inv] - 1.0                                           # (n,)

    # ---- tiling -----------------------------------------------------------------
    lim = _round_up(n, 128)
    bm = _round_up(min(int(block_m), lim), 128)
    bn = _round_up(min(int(block_n), lim), 128)
    n_pad = _round_up(n, math.lcm(bm, bn))
    dim_pad = _round_up(dim, 128)        # zero columns leave A @ A.T unchanged

    cf_pad = jnp.pad(cf, ((0, n_pad - n), (0, dim_pad - dim)))
    # Fold 1/T into the anchor stream once; contrast stream stays unscaled.
    a_mxu = (cf_pad * inv_temp).astype(mxu_dtype)
    b_mxu = cf_pad.astype(mxu_dtype)

    dot_precision = (lax.Precision.HIGHEST if mxu_dtype == jnp.float32
                     else lax.Precision.DEFAULT)
    kernel = functools.partial(
        _supcon_lse_kernel,
        n_valid=n, block_m=bm, block_n=bn, dot_precision=dot_precision)

    # VMEM plan (bf16, dim_pad=2048, 512x512 tiles): 2 streams x 2 buffers x 2 MiB
    # feature tiles + 2 x 256 KiB scratch + ~1 MiB logits  ->  well under 48 MiB.
    lse = pl.pallas_call(
        kernel,
        out_shape=jax.ShapeDtypeStruct((n_pad, 1), jnp.float32),
        grid_spec=pltpu.PrefetchScalarGridSpec(
            num_scalar_prefetch=0,
            grid=(n_pad // bm, n_pad // bn),
            in_specs=[
                pl.BlockSpec((bm, dim_pad), lambda i, j: (i, 0)),   # anchors (x 1/T)
                pl.BlockSpec((bn, dim_pad), lambda i, j: (j, 0)),   # contrast features
            ],
            out_specs=pl.BlockSpec((bm, 1), lambda i, j: (i, 0)),
            scratch_shapes=[pltpu.VMEM((bm, 128), jnp.float32),     # running max (lane-replicated)
                            pltpu.VMEM((bm, 128), jnp.float32)],    # running exp-sum
        ),
        compiler_params=pltpu.CompilerParams(
            dimension_semantics=("parallel", "arbitrary"),
            vmem_limit_bytes=48 * 1024 * 1024,   # v7x has 64 MiB/TC; v5e/v6e have 128 MiB
        ),
    )(a_mxu, b_mxu)[:n, 0]

    denom = jnp.where(pos_cnt < 1e-6, 1.0, pos_cnt)
    mean_log_prob_pos = jnp.where(pos_cnt < 1e-6, 0.0, pos_sum / denom - lse)
    # loss.view(anchor_count, batch_size).mean() == mean over all N anchors.
    return (loss_scale * mean_log_prob_pos).mean()


def _supcon_loss_ref(features, labels, temperature=0.07, base_temperature=0.07):
    """Pure-JAX reference mirroring the PyTorch forward (contrast_mode='all')."""
    bsz, n_views, dim = features.shape
    n = bsz * n_views
    cf = jnp.transpose(features, (1, 0, 2)).reshape(n, dim).astype(jnp.float32)
    lab = jnp.tile(labels.reshape(-1), n_views)
    mask = (lab[:, None] == lab[None, :]).astype(jnp.float32)
    logits = cf @ cf.T / temperature
    logits = logits - jnp.max(logits, axis=1, keepdims=True)
    logits_mask = 1.0 - jnp.eye(n, dtype=jnp.float32)
    mask = mask * logits_mask
    exp_logits = jnp.exp(logits) * logits_mask
    log_prob = logits - jnp.log(exp_logits.sum(1, keepdims=True))
    mpp = mask.sum(1)
    mpp = jnp.where(mpp < 1e-6, 1.0, mpp)
    mean_log_prob_pos = (mask * log_prob).sum(1) / mpp
    loss = -(temperature / base_temperature) * mean_log_prob_pos
    return loss.mean()


if __name__ == "__main__":
    key = jax.random.PRNGKey(0)
    kf, kl = jax.random.split(key)

    # --- primary small example (single-tile path) -------------------------------
    bsz, n_views, dim = 8, 2, 32
    features = jax.random.normal(kf, (bsz, n_views, dim), dtype=jnp.float32)
    features = features / jnp.linalg.norm(features, axis=-1, keepdims=True)
    labels = jax.random.randint(kl, (bsz,), 0, 3, dtype=jnp.int32)

    ref = _supcon_loss_ref(features, labels)
    loss_f32 = jax.block_until_ready(supcon_loss(features, labels, mxu_dtype=jnp.float32))
    assert jnp.allclose(loss_f32, ref, atol=1e-3, rtol=1e-3), (loss_f32, ref)
    loss_bf16 = jax.block_until_ready(supcon_loss(features, labels))
    assert jnp.allclose(loss_bf16, ref, atol=1e-1, rtol=5e-2), (loss_bf16, ref)

    # --- multi-tile example: exercises the interior fast path, the diagonal tile,
    #     padded columns in the last column tile and padded (discarded) rows ------
    kf2, kl2 = jax.random.split(jax.random.PRNGKey(1))
    bsz2, n_views2, dim2 = 80, 2, 32
    feats2 = jax.random.normal(kf2, (bsz2, n_views2, dim2), dtype=jnp.float32)
    feats2 = feats2 / jnp.linalg.norm(feats2, axis=-1, keepdims=True)
    labels2 = jax.random.randint(kl2, (bsz2,), 0, 5, dtype=jnp.int32)

    ref2 = _supcon_loss_ref(feats2, labels2)
    loss2_f32 = jax.block_until_ready(
        supcon_loss(feats2, labels2, block_m=128, block_n=128, mxu_dtype=jnp.float32))
    assert jnp.allclose(loss2_f32, ref2, atol=1e-3, rtol=1e-3), (loss2_f32, ref2)
    loss2_bf16 = jax.block_until_ready(
        supcon_loss(feats2, labels2, block_m=128, block_n=128))
    assert jnp.allclose(loss2_bf16, ref2, atol=1e-1, rtol=5e-2), (loss2_bf16, ref2)

    print("KERNEL_OK")
</pallas_src>

<mosaic_0001>
module attributes {stable_mosaic.version = 11 : i64} {
  func.func @_supcon_lse_kernel(%arg0: i32, %arg1: i32, %arg2: memref<128x128xf32, #tpu.memory_space<vmem>>, %arg3: memref<128x128xf32, #tpu.memory_space<vmem>>, %arg4: memref<128x1xf32, #tpu.memory_space<vmem>>, %arg5: memref<128x128xf32, #tpu.memory_space<vmem>>, %arg6: memref<128x128xf32, #tpu.memory_space<vmem>>) attributes {dimension_semantics = [#tpu.dimension_semantics<parallel>, #tpu.dimension_semantics<arbitrary>], iteration_bounds = array<i64: 1, 1>, scalar_prefetch = 0 : i64, scratch_operands = 2 : i64, tpu.core_type = #tpu.core_type<tc>, window_params = [{transform_indices = @transform_0, window_bounds = array<i64: 128, 128>}, {transform_indices = @transform_1, window_bounds = array<i64: 128, 128>}, {transform_indices = @transform_2, window_bounds = array<i64: 128, 1>}]} {
    %c0_i32 = arith.constant 0 : i32
    %0 = arith.cmpi eq, %arg1, %c0_i32 : i32
    %1 = arith.extui %0 : i1 to i32
    %c0_i32_0 = arith.constant 0 : i32
    %2 = arith.cmpi ne, %1, %c0_i32_0 : i32
    scf.if %2 {
      %cst_17 = arith.constant 0xFF800000 : f32
      %32 = vector.broadcast %cst_17 : f32 to vector<128x128xf32>
      %c0_18 = arith.constant 0 : index
      %c0_19 = arith.constant 0 : index
      %33 = vector.load %arg5[%c0_18, %c0_19] : memref<128x128xf32, #tpu.memory_space<vmem>>, vector<128x128xf32>
      tpu.vector_store %arg5[%c0_18, %c0_19], %32 {strides = array<i32>} : memref<128x128xf32, #tpu.memory_space<vmem>>, vector<128x128xf32>,
      %cst_20 = arith.constant 0.000000e+00 : f32
      %34 = vector.broadcast %cst_20 : f32 to vector<128x128xf32>
      %c0_21 = arith.constant 0 : index
      %c0_22 = arith.constant 0 : index
      %35 = vector.load %arg6[%c0_21, %c0_22] : memref<128x128xf32, #tpu.memory_space<vmem>>, vector<128x128xf32>
      tpu.vector_store %arg6[%c0_21, %c0_22], %34 {strides = array<i32>} : memref<128x128xf32, #tpu.memory_space<vmem>>, vector<128x128xf32>,
    } else {
    }
    %c0 = arith.constant 0 : index
    %c0_1 = arith.constant 0 : index
    %3 = vector.load %arg2[%c0, %c0_1] : memref<128x128xf32, #tpu.memory_space<vmem>>, vector<128x128xf32>
    %c0_2 = arith.constant 0 : index
    %c0_3 = arith.constant 0 : index
    %4 = vector.load %arg3[%c0_2, %c0_3] : memref<128x128xf32, #tpu.memory_space<vmem>>, vector<128x128xf32>
    %cst = arith.constant dense<0.000000e+00> : vector<128x128xf32>
    %5 = tpu.matmul %3, %4, %cst {dimension_numbers = #tpu.dot_dimension_numbers<[1], [1], [0], [0], [0, 0, 1, 0], [], []>, precision = #tpu.contract_precision<fp32>} : vector<128x128xf32>, vector<128x128xf32>, vector<128x128xf32> -> vector<128x128xf32>
    %c0_4 = arith.constant 0 : index
    %c0_5 = arith.constant 0 : index
    %6 = vector.load %arg5[%c0_4, %c0_5] : memref<128x128xf32, #tpu.memory_space<vmem>>, vector<128x128xf32>
    %cst_6 = arith.constant dense<0xFF800000> : vector<128xf32>
    %7 = vector.multi_reduction <maximumf>, %5, %cst_6 [1] : vector<128x128xf32> to vector<128xf32>
    %8 = vector.shape_cast %7 : vector<128xf32> to vector<128x1xf32>
    %9 = vector.broadcast %8 : vector<128x1xf32> to vector<128x128xf32>
    %10 = arith.maximumf %6, %9 : vector<128x128xf32>
    %11 = arith.subf %6, %10 : vector<128x128xf32>
    %12 = math.exp %11 : vector<128x128xf32>
    %13 = vector.extract_strided_slice %10 {offsets = [0, 0], sizes = [128, 1], strides = [1, 1]} : vector<128x128xf32> to vector<128x1xf32>
    %c128_i32 = arith.constant 128 : i32
    %14 = arith.muli %arg0, %c128_i32 : i32
    %c128_i32_7 = arith.constant 128 : i32
    %15 = arith.muli %arg1, %c128_i32_7 : i32
    %c128_i32_8 = arith.constant 128 : i32
    %16 = arith.addi %15, %c128_i32_8 : i32
    %17 = arith.cmpi slt, %14, %16 : i32
    %c128_i32_9 = arith.constant 128 : i32
    %18 = arith.addi %14, %c128_i32_9 : i32
    %19 = arith.cmpi slt, %15, %18 : i32
    %20 = arith.andi %17, %19 : i1
    %c0_i32_10 = arith.constant 0 : i32
    %21 = arith.cmpi eq, %arg1, %c0_i32_10 : i32
    %22 = arith.ori %20, %21 : i1
    %true = arith.constant true
    %23 = arith.xori %22, %true : i1
    %24 = arith.extui %23 : i1 to i32
    %c0_i32_11 = arith.constant 0 : i32
    %25 = arith.cmpi ne, %24, %c0_i32_11 : i32
    scf.if %25 {
      %32 = vector.broadcast %13 : vector<128x1xf32> to vector<128x128xf32>
      %33 = arith.subf %5, %32 : vector<128x128xf32>
      %34 = math.exp %33 : vector<128x128xf32>
      %c0_17 = arith.constant 0 : index
      %c0_18 = arith.constant 0 : index
      %35 = vector.load %arg6[%c0_17, %c0_18] : memref<128x128xf32, #tpu.memory_space<vmem>>, vector<128x128xf32>
      %36 = arith.mulf %12, %35 : vector<128x128xf32>
      %cst_19 = arith.constant dense<0.000000e+00> : vector<128xf32>
      %37 = vector.multi_reduction <add>, %34, %cst_19 [1] : vector<128x128xf32> to vector<128xf32>
      %38 = vector.shape_cast %37 : vector<128xf32> to vector<128x1xf32>
      %39 = vector.broadcast %38 : vector<128x1xf32> to vector<128x128xf32>
      %40 = arith.addf %36, %39 : vector<128x128xf32>
      %c0_20 = arith.constant 0 : index
      %c0_21 = arith.constant 0 : index
      %41 = vector.load %arg6[%c0_20, %c0_21] : memref<128x128xf32, #tpu.memory_space<vmem>>, vector<128x128xf32>
      tpu.vector_store %arg6[%c0_20, %c0_21], %40 {strides = array<i32>} : memref<128x128xf32, #tpu.memory_space<vmem>>, vector<128x128xf32>,
    } else {
    }
    %26 = arith.extui %22 : i1 to i32
    %c0_i32_12 = arith.constant 0 : i32
    %27 = arith.cmpi ne, %26, %c0_i32_12 : i32
    scf.if %27 {
      %32 = tpu.iota {dimensions = array<i32: 0>} : vector<128x1xi32>
      %33 = vector.broadcast %14 : i32 to vector<128x1xi32>
      %34 = arith.addi %33, %32 : vector<128x1xi32>
      %35 = tpu.iota {dimensions = array<i32: 1>} : vector<1x128xi32>
      %36 = vector.broadcast %15 : i32 to vector<1x128xi32>
      %37 = arith.addi %36, %35 : vector<1x128xi32>
      %38 = vector.broadcast %34 : vector<128x1xi32> to vector<128x128xi32>
      %39 = vector.broadcast %37 : vector<1x128xi32> to vector<128x128xi32>
      %40 = arith.cmpi ne, %38, %39 : vector<128x128xi32>
      %c16_i32 = arith.constant 16 : i32
      %41 = vector.broadcast %c16_i32 : i32 to vector<1x128xi32>
      %42 = arith.cmpi slt, %37, %41 : vector<1x128xi32>
      %43 = vector.broadcast %42 : vector<1x128xi1> to vector<128x128xi1>
      %44 = arith.andi %40, %43 : vector<128x128xi1>
      %45 = vector.broadcast %13 : vector<128x1xf32> to vector<128x128xf32>
      %46 = arith.subf %5, %45 : vector<128x128xf32>
      %47 = math.exp %46 : vector<128x128xf32>
      %cst_17 = arith.constant 0.000000e+00 : f32
      %48 = vector.broadcast %cst_17 : f32 to vector<128x128xf32>
      %49 = arith.select %44, %47, %48 : vector<128x128xi1>, vector<128x128xf32>
      %c0_18 = arith.constant 0 : index
      %c0_19 = arith.constant 0 : index
      %50 = vector.load %arg6[%c0_18, %c0_19] : memref<128x128xf32, #tpu.memory_space<vmem>>, vector<128x128xf32>
      %51 = arith.mulf %12, %50 : vector<128x128xf32>
      %cst_20 = arith.constant dense<0.000000e+00> : vector<128xf32>
      %52 = vector.multi_reduction <add>, %49, %cst_20 [1] : vector<128x128xf32> to vector<128xf32>
      %53 = vector.shape_cast %52 : vector<128xf32> to vector<128x1xf32>
      %54 = vector.broadcast %53 : vector<128x1xf32> to vector<128x128xf32>
      %55 = arith.addf %51, %54 : vector<128x128xf32>
      %c0_21 = arith.constant 0 : index
      %c0_22 = arith.constant 0 : index
      %56 = vector.load %arg6[%c0_21, %c0_22] : memref<128x128xf32, #tpu.memory_space<vmem>>, vector<128x128xf32>
      tpu.vector_store %arg6[%c0_21, %c0_22], %55 {strides = array<i32>} : memref<128x128xf32, #tpu.memory_space<vmem>>, vector<128x128xf32>,
    } else {
    }
    %c0_13 = arith.constant 0 : index
    %c0_14 = arith.constant 0 : index
    %28 = vector.load %arg5[%c0_13, %c0_14] : memref<128x128xf32, #tpu.memory_space<vmem>>, vector<128x128xf32>
    tpu.vector_store %arg5[%c0_13, %c0_14], %10 {strides = array<i32>} : memref<128x128xf32, #tpu.memory_space<vmem>>, vector<128x128xf32>,
    %c0_i32_15 = arith.constant 0 : i32
    %29 = arith.cmpi eq, %arg1, %c0_i32_15 : i32
    %30 = arith.extui %29 : i1 to i32
    %c0_i32_16 = arith.constant 0 : i32
    %31 = arith.cmpi ne, %30, %c0_i32_16 : i32
    scf.if %31 {
      %c0_17 = arith.constant 0 : index
      %c0_18 = arith.constant 0 : index
      %32 = vector.load %arg5[%c0_17, %c0_18] : memref<128x128xf32, #tpu.memory_space<vmem>>, vector<128x1xf32>
      %c0_19 = arith.constant 0 : index
      %c0_20 = arith.constant 0 : index
      %33 = vector.load %arg6[%c0_19, %c0_20] : memref<128x128xf32, #tpu.memory_space<vmem>>, vector<128x1xf32>
      %34 = math.log %33 : vector<128x1xf32>
      %35 = arith.addf %32, %34 : vector<128x1xf32>
      %c0_21 = arith.constant 0 : index
      %c0_22 = arith.constant 0 : index
      %36 = vector.load %arg4[%c0_21, %c0_22] : memref<128x1xf32, #tpu.memory_space<vmem>>, vector<128x1xf32>
      tpu.vector_store %arg4[%c0_21, %c0_22], %35 {strides = array<i32>} : memref<128x1xf32, #tpu.memory_space<vmem>>, vector<128x1xf32>,
    } else {
    }
    return
  }
  func.func @transform_0(%arg0: i32, %arg1: i32) -> (i32, i32) {
    %c0_i32 = arith.constant 0 : i32
    %c0_i32_0 = arith.constant 0 : i32
    return %arg0, %c0_i32 : i32, i32
  }
  func.func @transform_1(%arg0: i32, %arg1: i32) -> (i32, i32) {
    %c0_i32 = arith.constant 0 : i32
    %c0_i32_0 = arith.constant 0 : i32
    return %arg1, %c0_i32 : i32, i32
  }
  func.func @transform_2(%arg0: i32, %arg1: i32) -> (i32, i32) {
    %c0_i32 = arith.constant 0 : i32
    %c0_i32_0 = arith.constant 0 : i32
    return %arg0, %c0_i32 : i32, i32
  }
}

</mosaic_0001>

<bundles_post_ra>
// kernel: tpu_custom_call.1
= control target key start
LH: loop header
LB: loop body
LE: loop exit
PB: predicated region body
PF: predicated region fallthrough
CT: control target
= control target key end

     0   :  { %7 = vsyncpa [#allocation5], 0  ;;  %s3855_s0 = inlined_call_operand.hbm [shape: f32[128,128], index: 0, kind: input, shape index: {}]   ;;  %s3856_s1 = inlined_call_operand.hbm [shape: f32[128,128], index: 1, kind: input, shape index: {}]   ;;  %s3857_s2 = inlined_call_operand.vmem [shape: f32[128,1], index: 2, kind: output, shape index: {}]  }
   0x1   :  { %8 = vsyncpa [#allocation7], 0  ;;  %s3130_s9 = smov [#allocation4]   ;;  %s3082_s13 = scalar_lea.hbm %s3855_s0, 2048 }
   0x2   :  { %s14_s10 = sshll.u32 %s3130_s9, 4  ;;  %p3083_p0 = scmp.ne.s32.totalorder %s3855_s0, %s3082_s13  ;;  %s15_s10 = int_to_ptr.vmem [resolvable:$true] %s14_s10 }
   0x3   :  { %p3086_p1 = scmp.lt.u32.totalorder %s3082_s13, %s3855_s0 }
   0x5   :  { %p3088_p2 = pnand %p3086_p1, %p3083_p0 }
   0x7   :  { %3091 = shalt.err (!%p3088_p2)
}
   0x8   :  { %s3092_s18 = scalar_lea.vmem %s15_s10, 2048  ;;  %p3097_p4 = scmp.lt.s32.totalorder %s15_s10, %s15_s10 }
   0x9   :  { %p3093_p3 = scmp.ne.s32.totalorder %s15_s10, %s3092_s18  ;;  %p3098_p5 = scmp.lt.s32.totalorder %s3092_s18, %s3092_s18 }
   0xb   :  { %p3099_p6 = por %p3098_p5, %p3097_p4 }
   0xd   :  { %p3100_p7 = pnand %p3099_p6, %p3093_p3 }
   0xf   :  { %3103 = shalt.err (!%p3100_p7)
}
  0x10   :  { %s3131_s19 = smov 128   ;;  %s3132_s20 = smov 8  }
  0x11   :  { %20 = dma.hbm_to_vmem [thread:$0]  %s3855_s0, 2048, %s15_s10, [#allocation5], %s3131_s19, %s3131_s19, %s3132_s20  }
  0x12   :  { %s3133_s23 = smov [#allocation6]   ;;  %s3104_s27 = scalar_lea.hbm %s3856_s1, 2048 }
  0x13   :  { %s26_s24 = sshll.u32 %s3133_s23, 4  ;;  %p3105_p8 = scmp.ne.s32.totalorder %s3856_s1, %s3104_s27  ;;  %s27_s24 = int_to_ptr.vmem [resolvable:$true] %s26_s24 }
  0x14   :  { %p3108_p9 = scmp.lt.u32.totalorder %s3104_s27, %s3856_s1 }
  0x16   :  { %p3110_p10 = pnand %p3108_p9, %p3105_p8 }
  0x18   :  { %3113 = shalt.err (!%p3110_p10)
}
  0x19   :  { %s3114_s4 = scalar_lea.vmem %s27_s24, 2048  ;;  %p3119_p12 = scmp.lt.s32.totalorder %s27_s24, %s27_s24 }
  0x1a   :  { %p3115_p11 = scmp.ne.s32.totalorder %s27_s24, %s3114_s4  ;;  %p3120_p13 = scmp.lt.s32.totalorder %s3114_s4, %s3114_s4 }
  0x1c   :  { %p3121_p0 = por %p3120_p13, %p3119_p12 }
  0x1e   :  { %p3122_p1 = pnand %p3121_p0, %p3115_p11 }
  0x20   :  { %3125 = shalt.err (!%p3122_p1)
}
  0x21   :  { %32 = dma.hbm_to_vmem [thread:$0]  %s3856_s1, 2048, %s27_s24, [#allocation7], %s3131_s19, %s3131_s19, %s3132_s20  }
  0x22   :  { %3126 = dma.done.wait [#allocation5], 2048  }
  0x23   :  { %3127 = vsyncadd [#allocation5], 4294965248 }
  0x24   :  { %3128 = dma.done.wait [#allocation7], 2048  }
  0x25   :  { %3129 = vsyncadd [#allocation7], 4294965248  ;;  %v3174_v0 = vld [vmem:[#allocation6] sm:$0xff]  ;;  %v3176_v1 = vld [vmem:[#allocation6 + $0x8] sm:$0xff] }
  0x26   :  { %v3178_v2 = vld [vmem:[#allocation6 + $0x10] sm:$0xff]  ;;  %v108_v3 = vand.u32 4294901760, %v3174_v0  ;;  %v111_v4 = vand.u32 4294901760, %v3176_v1  ;;  %v3182_v5 = vld [vmem:[#allocation6 + $0x18] sm:$0xff]  ;;  %v95_v10 = vld [vmem:[#allocation6 + $0x20] sm:$0xff] }
  0x27   :  { %v114_v6 = vand.u32 4294901760, %v3178_v2  ;;  %v117_v7 = vand.u32 4294901760, %v3182_v5  ;;  %v96_v11 = vld [vmem:[#allocation6 + $0x28] sm:$0xff]  ;;  %v75_v12 = vld [vmem:[#allocation4] sm:$0xff]  ;;  %v120_v14 = vand.u32 4294901760, %v95_v10  ;;  %v97_v19 = vld [vmem:[#allocation6 + $0x30] sm:$0xff] }
  0x28   :  { %v3190_v8 = vpack.c.bf16 %v111_v4, %v108_v3  ;;  %v3202_v13 = vand.u32 4294901760, %v75_v12  ;;  %v123_v15 = vand.u32 4294901760, %v96_v11  ;;  %v98_v20 = vld [vmem:[#allocation6 + $0x38] sm:$0xff]  ;;  %v126_v23 = vand.u32 4294901760, %v97_v19  ;;  %v99_v26 = vld [vmem:[#allocation6 + $0x40] sm:$0xff]  ;;  %v100_v27 = vld [vmem:[#allocation6 + $0x48] sm:$0xff] }
  0x29   :  { %v3196_v9 = vpack.c.bf16 %v117_v7, %v114_v6  ;;  %v129_v24 = vand.u32 4294901760, %v98_v20  ;;  %v132_v28 = vand.u32 4294901760, %v99_v26  ;;  %v135_v29 = vand.u32 4294901760, %v100_v27  ;;  %v101_v31 = vld [vmem:[#allocation6 + $0x50] sm:$0xff]  ;;  %v102_v32 = vld [vmem:[#allocation6 + $0x58] sm:$0xff]  ;;  %v103_v36 = vld [vmem:[#allocation6 + $0x60] sm:$0xff] }
  0x2a   :  { %2708 = vmatprep.subr.bf16.mxu1 %v3190_v8  ;;  %2804 = vmatprep.subr.bf16.mxu0 %v3190_v8  ;;  %v3207_v16 = vsub.f32 %v75_v12, %v3202_v13  ;;  %v3210_v18 = vpack.c.bf16 %v123_v15, %v120_v14  ;;  %v138_v33 = vand.u32 4294901760, %v101_v31  ;;  %v141_v34 = vand.u32 4294901760, %v102_v32  ;;  %v104_v37 = vld [vmem:[#allocation6 + $0x68] sm:$0xff]  ;;  %v105_v40 = vld [vmem:[#allocation6 + $0x70] sm:$0xff]  ;;  %v106_v46 = vld [vmem:[#allocation6 + $0x78] sm:$0xff] }
  0x2b   :  { %2710 = vmatpush3.bf16.xpose.msra.mxu1 %v3190_v8  ;;  %2806 = vmatpush3.bf16.xpose.msra.mxu0 %v3190_v8  ;;  %v3217_v25 = vpack.c.bf16 %v129_v24, %v126_v23  ;;  %v3223_v30 = vpack.c.bf16 %v135_v29, %v132_v28  ;;  %v144_v38 = vand.u32 4294901760, %v103_v36  ;;  %v147_v39 = vand.u32 4294901760, %v104_v37  ;;  %v76_v60 = vld [vmem:[#allocation4 + $0x8] sm:$0xff] }
  0x2c   :  { %2712 = vmatprep.subr.bf16.mxu1 %v3196_v9  ;;  %2808 = vmatprep.subr.bf16.mxu0 %v3196_v9  ;;  %3886 = vst [vmem:[#allocation10_spill] sm:$0xff] %v3207_v16  ;;  %v190_v17 = vand.u32 4294901760, %v3207_v16  ;;  %v3229_v35 = vpack.c.bf16 %v141_v34, %v138_v33  ;;  %v150_v41 = vand.u32 4294901760, %v105_v40  ;;  %v350_v43 = vsub.f32 %v3174_v0, %v108_v3 }
  0x2d   :  { %3887 = vst [vmem:[#allocation11_spill] sm:$0xff] %v3217_v25  ;;  %3888 = vst [vmem:[#allocation12_spill] sm:$0xff] %v3223_v30  ;;  %v3235_v42 = vpack.c.bf16 %v147_v39, %v144_v38  ;;  %v357_v44 = vsub.f32 %v3176_v1, %v111_v4  ;;  %v3246_v45 = vsub.f32 %v3178_v2, %v114_v6  ;;  %v153_v59 = vand.u32 4294901760, %v106_v46  ;;  %v77_v6 = vld [vmem:[#allocation4 + $0x10] sm:$0xff] }
  0x2e   :  { %v191_v21 = vsub.f32 %v3207_v16, %v190_v17  ;;  %2571 = vmatprep.mubr.f32.mxu0 %v190_v17  ;;  %3889 = vst [vmem:[#allocation13_spill] sm:$0xff] %v3229_v35  ;;  %v3251_v47 = vsub.f32 %v3182_v5, %v117_v7  ;;  %v3253_v48 = vsub.f32 %v95_v10, %v120_v14  ;;  %v351_v0 = vand.u32 4294901760, %v350_v43  ;;  %v78_v7 = vld [vmem:[#allocation4 + $0x18] sm:$0xff]  ;;  %v79_v14 = vld [vmem:[#allocation4 + $0x20] sm:$0xff] }
  0x2f   :  { %3890 = vst [vmem:[#allocation14_spill] sm:$0xff] %v3235_v42  ;;  %v3255_v49 = vsub.f32 %v96_v11, %v123_v15  ;;  %v3257_v50 = vsub.f32 %v97_v19, %v126_v23  ;;  %v3259_v51 = vsub.f32 %v98_v20, %v129_v24  ;;  %v3261_v52 = vsub.f32 %v99_v26, %v132_v28  ;;  %v80_v23 = vld [vmem:[#allocation4 + $0x28] sm:$0xff] }
  0x30   :  { %v192_v22 = vand.u32 4294901760, %v191_v21  ;;  %v3263_v53 = vsub.f32 %v100_v27, %v135_v29  ;;  %v3265_v54 = vpack.c.bf16 %v357_v44, %v350_v43  ;;  %v3267_v55 = vsub.f32 %v101_v31, %v138_v33 }
  0x31   :  { %v3269_v56 = vsub.f32 %v102_v32, %v141_v34  ;;  %v3271_v57 = vsub.f32 %v103_v36, %v144_v38  ;;  %v3275_v58 = vpack.c.bf16 %v3251_v47, %v3246_v45  ;;  %v3279_v61 = vsub.f32 %v104_v37, %v147_v39  ;;  %v81_v36 = vld [vmem:[#allocation4 + $0x30] sm:$0xff]  ;;  %v82_v37 = vld [vmem:[#allocation4 + $0x38] sm:$0xff] }
  0x32   :  { %2403 = vmatprep.mubr.f32.mxu1 %v192_v22  ;;  %v3283_v62 = vpack.c.bf16 %v3255_v49, %v3253_v48  ;;  %v3287_v63 = vpack.c.bf16 %v3259_v51, %v3257_v50  ;;  %v358_v1 = vand.u32 4294901760, %v357_v44  ;;  %v3293_v2 = vpack.c.bf16 %v3263_v53, %v3261_v52 }
  0x33   :  { %2714 = vmatpush3.bf16.xpose.msra.mxu1 %v3196_v9  ;;  %2810 = vmatpush3.bf16.xpose.msra.mxu0 %v3196_v9  ;;  %v3297_v3 = vpack.c.bf16 %v3269_v56, %v3267_v55  ;;  %v3301_v4 = vpack.c.bf16 %v3279_v61, %v3271_v57  ;;  %v3303_v5 = vand.u32 4294901760, %v76_v60  ;;  %v3305_v10 = vpack.c.bf16 %v153_v59, %v150_v41 }
  0x34   :  { %2716 = vmatprep.subr.bf16.mxu1 %v3210_v18  ;;  %2812 = vmatprep.subr.bf16.mxu0 %v3210_v18  ;;  %3891 = vst [vmem:[#allocation15_spill] sm:$0xff] %v3287_v63  ;;  %3892 = vst [vmem:[#allocation16_spill] sm:$0xff] %v3293_v2  ;;  %v352_v11 = vsub.f32 %v350_v43, %v351_v0  ;;  %v359_v12 = vsub.f32 %v357_v44, %v358_v1  ;;  %v3307_v15 = vand.u32 4294901760, %v77_v6  ;;  %v83_v44 = vld [vmem:[#allocation4 + $0x40] sm:$0xff] }
  0x35   :  { %3893 = vst [vmem:[#allocation17_spill] sm:$0xff] %v3297_v3  ;;  %3894 = vst [vmem:[#allocation18_spill] sm:$0xff] %v3301_v4  ;;  %v3309_v17 = vsub.f32 %v105_v40, %v150_v41  ;;  %v3311_v19 = vsub.f32 %v106_v46, %v153_v59  ;;  %v3314_v20 = vsub.f32 %v76_v60, %v3303_v5  ;;  %v3316_v21 = vand.u32 4294901760, %v78_v7 }
  0x36   :  { %3895 = vst [vmem:[#allocation19_spill] sm:$0xff] %v3305_v10  ;;  %v3320_v22 = vand.u32 4294901760, %v79_v14  ;;  %v353_v26 = vand.u32 4294901760, %v352_v11  ;;  %v360_v27 = vand.u32 4294901760, %v359_v12  ;;  %v365_v28 = vand.u32 4294901760, %v3246_v45 }
  0x37   :  { %3896 = vst [vmem:[#allocation20_spill] sm:$0xff] %v3314_v20  ;;  %v3324_v24 = vpack.c.bf16 %v3311_v19, %v3309_v17  ;;  %v372_v29 = vand.u32 4294901760, %v3251_v47  ;;  %v3331_v31 = vsub.f32 %v77_v6, %v3307_v15  ;;  %v200_v32 = vand.u32 4294901760, %v3314_v20 }
  0x38   :  { %v3335_v33 = vsub.f32 %v78_v7, %v3316_v21  ;;  %v3337_v34 = vand.u32 4294901760, %v80_v23  ;;  %v3340_v38 = vsub.f32 %v79_v14, %v3320_v22  ;;  %v2739_v39 = vpack.c.bf16 %v360_v27, %v353_v26 }
  0x39   :  { %3897 = vst [vmem:[#allocation21_spill] sm:$0xff] %v3324_v24  ;;  %3898 = vst [vmem:[#allocation22_spill] sm:$0xff] %v3331_v31  ;;  %v2835_v40 = vpack.c.bf16 %v358_v1, %v351_v0  ;;  %v366_v41 = vsub.f32 %v3246_v45, %v365_v28  ;;  %v373_v43 = vsub.f32 %v3251_v47, %v372_v29  ;;  %v210_v46 = vand.u32 4294901760, %v3331_v31  ;;  %v84_v0 = vld [vmem:[#allocation4 + $0x48] sm:$0xff] }
  0x3a   :  { %3899 = vst [vmem:[#allocation23_spill] sm:$0xff] %v3335_v33  ;;  %3900 = vst [vmem:[#allocation24_spill] sm:$0xff] %v3340_v38  ;;  %v3345_v59 = vand.u32 4294901760, %v81_v36  ;;  %v3347_v60 = vand.u32 4294901760, %v82_v37  ;;  %v201_v6 = vsub.f32 %v3314_v20, %v200_v32  ;;  %v220_v7 = vand.u32 4294901760, %v3335_v33 }
  0x3b   :  { %2718 = vmatpush3.bf16.xpose.msra.mxu1 %v3210_v18  ;;  %2814 = vmatpush3.bf16.xpose.msra.mxu0 %v3210_v18  ;;  %v3352_v11 = vsub.f32 %v80_v23, %v3337_v34  ;;  %v230_v45 = vand.u32 4294901760, %v3340_v38  ;;  %v3357_v47 = vand.u32 4294901760, %v83_v44  ;;  %v367_v1 = vand.u32 4294901760, %v366_v41  ;;  %v85_v41 = vld [vmem:[#allocation4 + $0x50] sm:$0xff] }
  0x3c   :  { %2720 = vmatprep.subr.bf16.mxu1 %v3217_v25  ;;  %2816 = vmatprep.subr.bf16.mxu0 %v3217_v25  ;;  %v374_v12 = vand.u32 4294901760, %v373_v43  ;;  %v379_v14 = vand.u32 4294901760, %v3253_v48  ;;  %v386_v26 = vand.u32 4294901760, %v3255_v49  ;;  %v211_v23 = vsub.f32 %v3331_v31, %v210_v46  ;;  %v86_v31 = vld [vmem:[#allocation4 + $0x58] sm:$0xff] }
  0x3d   :  { %3901 = vst [vmem:[#allocation25_spill] sm:$0xff] %v3352_v11  ;;  %v3363_v27 = vsub.f32 %v81_v36, %v3345_v59  ;;  %v3366_v20 = vsub.f32 %v82_v37, %v3347_v60  ;;  %v221_v24 = vsub.f32 %v3335_v33, %v220_v7  ;;  %v3370_v4 = vand.u32 4294901760, %v84_v0 }
  0x3e   :  { %v231_v43 = vsub.f32 %v3340_v38, %v230_v45  ;;  %v2743_v3 = vpack.c.bf16 %v374_v12, %v367_v1  ;;  %v2839_v36 = vpack.c.bf16 %v372_v29, %v365_v28  ;;  %v380_v16 = vsub.f32 %v3253_v48, %v379_v14  ;;  %v88_v12 = vld [vmem:[#allocation4 + $0x68] sm:$0xff] }
  0x3f   :  { %3902 = vst [vmem:[#allocation26_spill] sm:$0xff] %v3363_v27  ;;  %v387_v37 = vsub.f32 %v3255_v49, %v386_v26  ;;  %v250_v33 = vand.u32 4294901760, %v3363_v27  ;;  %v3878_v2 = vand.u32 4294901760, %v3366_v20  ;;  %v222_v38 = vand.u32 4294901760, %v221_v24 }
  0x40   :  { %v3384_v1 = vsub.f32 %v84_v0, %v3370_v4  ;;  %v3386_v28 = vand.u32 4294901760, %v86_v31  ;;  %v232_v48 = vand.u32 4294901760, %v231_v43  ;;  %v393_v24 = vand.u32 4294901760, %v3257_v50 }
  0x41   :  { %v251_v0 = vsub.f32 %v3363_v27, %v250_v33 }
  0x42   :  { %3904 = vst [vmem:[#allocation28_spill] sm:$0xff] %v3386_v28 }
  0x43   :  { %2722 = vmatpush3.bf16.xpose.msra.mxu1 %v3217_v25  ;;  %2818 = vmatpush3.bf16.xpose.msra.mxu0 %v3217_v25  ;;  %v3380_v25 = vand.u32 4294901760, %v85_v41 }
  0x44   :  { %2724 = vmatprep.subr.bf16.mxu1 %v3223_v30  ;;  %2820 = vmatprep.subr.bf16.mxu0 %v3223_v30 }
  0x45   :  { %3903 = vst [vmem:[#allocation27_spill] sm:$0xff] %v3380_v25 }
  0x4b   :  { %2726 = vmatpush3.bf16.xpose.msra.mxu1 %v3223_v30  ;;  %2822 = vmatpush3.bf16.xpose.msra.mxu0 %v3223_v30  ;;  %v212_v30 = vand.u32 4294901760, %v211_v23  ;;  %v400_v23 = vand.u32 4294901760, %v3259_v51 }
  0x4c   :  { %2728 = vmatprep.subr.bf16.mxu1 %v3229_v35  ;;  %2824 = vmatprep.subr.bf16.mxu0 %v3229_v35 }
  0x53   :  { %2730 = vmatpush3.bf16.xpose.msra.mxu1 %v3229_v35  ;;  %2826 = vmatpush3.bf16.xpose.msra.mxu0 %v3229_v35  ;;  %v3374_v35 = vsub.f32 %v83_v44, %v3357_v47 }
  0x54   :  { %2732 = vmatprep.subr.bf16.mxu1 %v3235_v42  ;;  %2828 = vmatprep.subr.bf16.mxu0 %v3235_v42 }
  0x55   :  { %v270_v49 = vand.u32 4294901760, %v3374_v35 }
  0x5b   :  { %2734 = vmatpush3.bf16.xpose.msra.mxu1 %v3235_v42  ;;  %2830 = vmatpush3.bf16.xpose.msra.mxu0 %v3235_v42  ;;  %v240_v42 = vand.u32 4294901760, %v3352_v11 }
  0x5c   :  { %2736 = vmatprep.subr.bf16.mxu1 %v3305_v10  ;;  %2832 = vmatprep.subr.bf16.mxu0 %v3305_v10 }
  0x5d   :  { %v241_v44 = vsub.f32 %v3352_v11, %v240_v42  ;;  %v3404_v11 = vand.u32 4294901760, %v88_v12 }
  0x5f   :  { %v242_v43 = vand.u32 4294901760, %v241_v44  ;;  %v401_v44 = vsub.f32 %v3259_v51, %v400_v23 }
  0x63   :  { %2738 = vmatpush3.bf16.xpose.msra.mxu1 %v3305_v10  ;;  %2834 = vmatpush3.bf16.xpose.msra.mxu0 %v3305_v10  ;;  %v202_v10 = vand.u32 4294901760, %v201_v6  ;;  %v87_v6 = vld [vmem:[#allocation4 + $0x60] sm:$0xff] }
  0x64   :  { %2740 = vmatprep.subr.bf16.mxu1 %v2739_v39  ;;  %2836 = vmatprep.subr.bf16.mxu0 %v2835_v40  ;;  %v3389_v29 = vand.u32 4294901760, %v87_v6 }
  0x6a   :  { %2404 = vmatmul.mubr.f32.vlgmr.msra.gmra.mrb[0].mxu1 %v202_v10  ;;  %2572 = vmatmul.mubr.f32.vlgmr.msra.gmra.mrb[0].mxu0 %v200_v32  ;;  %v381_v10 = vand.u32 4294901760, %v380_v16  ;;  %v388_v32 = vand.u32 4294901760, %v387_v37  ;;  %v280_v16 = vand.u32 4294901760, %v3384_v1  ;;  %v3402_v37 = vsub.f32 %v86_v31, %v3386_v28 }
  0x6b   :  { %2742 = vmatpush3.bf16.xpose.msra.mxu1 %v2739_v39  ;;  %2838 = vmatpush3.bf16.xpose.msra.mxu0 %v2835_v40  ;;  %v261_v39 = vsub.f32 %v3366_v20, %v3878_v2  ;;  %v3398_v40 = vsub.f32 %v85_v41, %v3380_v25  ;;  %v3408_v2 = vsub.f32 %v87_v6, %v3389_v29  ;;  %v90_v41 = vld [vmem:[#allocation4 + $0x78] sm:$0xff]  ;;  %v252_v25 = vand.u32 4294901760, %v251_v0 }
  0x6c   :  { %2744 = vmatprep.subr.bf16.mxu1 %v2743_v3  ;;  %2840 = vmatprep.subr.bf16.mxu0 %v2839_v36  ;;  %3905 = vst [vmem:[#allocation29_spill] sm:$0xff] %v3402_v37  ;;  %v2747_v27 = vpack.c.bf16 %v388_v32, %v381_v10  ;;  %v300_v6 = vand.u32 4294901760, %v3402_v37  ;;  %v402_v10 = vand.u32 4294901760, %v401_v44  ;;  %v414_v32 = vand.u32 4294901760, %v3263_v53 }
  0x6d   :  { %2406 = vmatprep.mubr.f32.mxu1 %v212_v30  ;;  %2574 = vmatprep.mubr.f32.mxu0 %v210_v46  ;;  %v89_v30 = vld [vmem:[#allocation4 + $0x70] sm:$0xff]  ;;  %v271_v46 = vsub.f32 %v3374_v35, %v270_v49  ;;  %v262_v31 = vand.u32 4294901760, %v261_v39  ;;  %v290_v28 = vand.u32 4294901760, %v3398_v40  ;;  %v310_v51 = vand.u32 4294901760, %v3408_v2 }
  0x6e   :  { %2407 = vmatmul.mubr.f32.gmra.mrb[2].mxu1 %v222_v38  ;;  %2575 = vmatmul.mubr.f32.gmra.mrb[2].mxu0 %v220_v7  ;;  %v2843_v38 = vpack.c.bf16 %v386_v26, %v379_v14  ;;  %v394_v7 = vsub.f32 %v3257_v50, %v393_v24  ;;  %v3413_v63 = vand.u32 4294901760, %v89_v30  ;;  %v3420_v14 = vand.u32 4294901760, %v90_v41 }
  0x6f   :  { %2409 = vmatprep.mubr.f32.mxu1 %v232_v48  ;;  %2577 = vmatprep.mubr.f32.mxu0 %v230_v45  ;;  %v281_v45 = vsub.f32 %v3384_v1, %v280_v16  ;;  %v3418_v48 = vsub.f32 %v88_v12, %v3404_v11  ;;  %v272_v50 = vand.u32 4294901760, %v271_v46  ;;  %v291_v12 = vsub.f32 %v3398_v40, %v290_v28 }
  0x70   :  { %v395_v26 = vand.u32 4294901760, %v394_v7  ;;  %v3427_v0 = vsub.f32 %v89_v30, %v3413_v63  ;;  %v301_v39 = vsub.f32 %v3402_v37, %v300_v6  ;;  %v3434_v46 = vsub.f32 %v90_v41, %v3420_v14 }
  0x71   :  { %v2847_v7 = vpack.c.bf16 %v400_v23, %v393_v24  ;;  %v415_v44 = vsub.f32 %v3263_v53, %v414_v32  ;;  %v428_v53 = vand.u32 4294901760, %v3269_v56 }
  0x72   :  { %2410 = vmatmul.mubr.f32.gmra.mrb[4].mxu1 %v242_v43  ;;  %2578 = vmatmul.mubr.f32.gmra.mrb[4].mxu0 %v240_v42  ;;  %v407_v42 = vand.u32 4294901760, %v3261_v52  ;;  %v320_v43 = vand.u32 4294901760, %v3418_v48  ;;  %v340_v41 = vand.u32 4294901760, %v3434_v46 }
  0x73   :  { %2746 = vmatpush3.bf16.xpose.msra.mxu1 %v2743_v3  ;;  %2842 = vmatpush3.bf16.xpose.msra.mxu0 %v2839_v36  ;;  %v3906_v3 = vand.u32 4294901760, %v3366_v20  ;;  %v282_v36 = vand.u32 4294901760, %v281_v45  ;;  %v330_v45 = vand.u32 4294901760, %v3427_v0  ;;  %v416_v23 = vand.u32 4294901760, %v415_v44 }
  0x74   :  { %2748 = vmatprep.subr.bf16.mxu1 %v2747_v27  ;;  %2844 = vmatprep.subr.bf16.mxu0 %v2843_v38  ;;  %v408_v30 = vsub.f32 %v3261_v52, %v407_v42  ;;  %v321_v37 = vsub.f32 %v3418_v48, %v320_v43  ;;  %v421_v52 = vand.u32 4294901760, %v3267_v55 }
  0x75   :  { %2412 = vmatprep.mubr.f32.mxu1 %v252_v25  ;;  %2580 = vmatprep.mubr.f32.mxu0 %v250_v33  ;;  %v311_v25 = vsub.f32 %v3408_v2, %v310_v51  ;;  %v2751_v33 = vpack.c.bf16 %v402_v10, %v395_v26  ;;  %v341_v26 = vsub.f32 %v3434_v46, %v340_v41 }
  0x76   :  { %2413 = vmatmul.mubr.f32.gmra.mrb[6].mxu1 %v262_v31  ;;  %2581 = vmatmul.mubr.f32.gmra.mrb[6].mxu0 %v3906_v3  ;;  %v292_v31 = vand.u32 4294901760, %v291_v12  ;;  %v302_v3 = vand.u32 4294901760, %v301_v39  ;;  %v409_v24 = vand.u32 4294901760, %v408_v30  ;;  %v422_v10 = vsub.f32 %v3267_v55, %v421_v52 }
  0x77   :  { %2415 = vmatprep.mubr.f32.mxu1 %v272_v50  ;;  %2583 = vmatprep.mubr.f32.mxu0 %v270_v49  ;;  %v312_v49 = vand.u32 4294901760, %v311_v25  ;;  %v322_v50 = vand.u32 4294901760, %v321_v37  ;;  %v429_v12 = vsub.f32 %v3269_v56, %v428_v53  ;;  %v342_v39 = vand.u32 4294901760, %v341_v26  ;;  %v3923_v26 = vld [vmem:[#allocation24_spill] sm:$0xff] }
  0x78   :  { %v2855_v56 = vpack.c.bf16 %v428_v53, %v421_v52  ;;  %v3919_v52 = vld [vmem:[#allocation19_spill] sm:$0xff]  ;;  %v3920_v53 = vld [vmem:[#allocation20_spill] sm:$0xff] }
  0x79   :  { %v430_v37 = vand.u32 4294901760, %v429_v12 }
  0x7a   :  { %2416 = vmatmul.mubr.f32.gmra.mrb[8].mxu1 %v282_v36  ;;  %2584 = vmatmul.mubr.f32.gmra.mrb[8].mxu0 %v280_v16  ;;  %v331_v16 = vsub.f32 %v3427_v0, %v330_v45 }
  0x7b   :  { %2750 = vmatpush3.bf16.xpose.msra.mxu1 %v2747_v27  ;;  %2846 = vmatpush3.bf16.xpose.msra.mxu0 %v2843_v38  ;;  %v2755_v27 = vpack.c.bf16 %v416_v23, %v409_v24  ;;  %v2851_v38 = vpack.c.bf16 %v414_v32, %v407_v42  ;;  %v3916_v24 = vld [vmem:[#allocation18_spill] sm:$0xff] }
  0x7c   :  { %2752 = vmatprep.subr.bf16.mxu1 %v2751_v33  ;;  %2848 = vmatprep.subr.bf16.mxu0 %v2847_v7  ;;  %v332_v36 = vand.u32 4294901760, %v331_v16  ;;  %v3917_v23 = vld [vmem:[#allocation14_spill] sm:$0xff] }
  0x7d   :  { %2418 = vmatprep.mubr.f32.mxu1 %v292_v31  ;;  %2586 = vmatprep.mubr.f32.mxu0 %v290_v28  ;;  %v423_v28 = vand.u32 4294901760, %v422_v10  ;;  %v3921_v16 = vld [vmem:[#allocation22_spill] sm:$0xff] }
  0x7e   :  { %2419 = vmatmul.mubr.f32.gmra.mrb[10].mxu1 %v302_v3  ;;  %2587 = vmatmul.mubr.f32.gmra.mrb[10].mxu0 %v300_v6  ;;  %v435_v6 = vand.u32 4294901760, %v3271_v57 }
  0x7f   :  { %2421 = vmatprep.mubr.f32.mxu1 %v312_v49  ;;  %2589 = vmatprep.mubr.f32.mxu0 %v310_v51  ;;  %v442_v51 = vand.u32 4294901760, %v3279_v61  ;;  %v2759_v55 = vpack.c.bf16 %v430_v37, %v423_v28  ;;  %v3915_v49 = vld [vmem:[#allocation13_spill] sm:$0xff] }
  0x80   :  { %v436_v42 = vsub.f32 %v3271_v57, %v435_v6 }
  0x81   :  { %v443_v32 = vsub.f32 %v3279_v61, %v442_v51  ;;  %v2859_v44 = vpack.c.bf16 %v442_v51, %v435_v6 }
  0x82   :  { %2422 = vmatmul.mubr.f32.gmra.mrb[12].mxu1 %v322_v50  ;;  %2590 = vmatmul.mubr.f32.gmra.mrb[12].mxu0 %v320_v43  ;;  %v437_v43 = vand.u32 4294901760, %v436_v42  ;;  %v3922_v50 = vld [vmem:[#allocation23_spill] sm:$0xff] }
  0x83   :  { %2754 = vmatpush3.bf16.xpose.msra.mxu1 %v2751_v33  ;;  %2850 = vmatpush3.bf16.xpose.msra.mxu0 %v2847_v7  ;;  %v444_v25 = vand.u32 4294901760, %v443_v32  ;;  %v449_v33 = vand.u32 4294901760, %v3309_v17  ;;  %v456_v7 = vand.u32 4294901760, %v3311_v19 }
  0x84   :  { %2756 = vmatprep.subr.bf16.mxu1 %v2755_v27  ;;  %2852 = vmatprep.subr.bf16.mxu0 %v2851_v38 }
  0x85   :  { %2424 = vmatprep.mubr.f32.mxu1 %v332_v36  ;;  %2592 = vmatprep.mubr.f32.mxu0 %v330_v45  ;;  %v2763_v30 = vpack.c.bf16 %v444_v25, %v437_v43  ;;  %v450_v31 = vsub.f32 %v3309_v17, %v449_v33  ;;  %v457_v45 = vsub.f32 %v3311_v19, %v456_v7  ;;  %v3913_v17 = vld [vmem:[#allocation10_spill] sm:$0xff]  ;;  %v3914_v19 = vld [vmem:[#allocation17_spill] sm:$0xff] }
  0x86   :  { %2425 = vmatmul.mubr.f32.gmra.mrb[14].mxu1 %v342_v39  ;;  %2593 = vmatmul.mubr.f32.gmra.mrb[14].mxu0 %v340_v41  ;;  %v2863_v41 = vpack.c.bf16 %v456_v7, %v449_v33 }
  0x87   :  { %2459 = vmatprep.mubr.f32.mxu1 %v3202_v13  ;;  %2627 = vmatprep.mubr.f32.mxu0 %v3202_v13  ;;  %v451_v57 = vand.u32 4294901760, %v450_v31  ;;  %v458_v61 = vand.u32 4294901760, %v457_v45 }
  0x89   :  { %v2767_v3 = vpack.c.bf16 %v458_v61, %v451_v57 }
  0x8b   :  { %2758 = vmatpush3.bf16.xpose.msra.mxu1 %v2755_v27  ;;  %2854 = vmatpush3.bf16.xpose.msra.mxu0 %v2851_v38  ;;  %v3924_v27 = vld [vmem:[#allocation25_spill] sm:$0xff]  ;;  %v3925_v38 = vld [vmem:[#allocation26_spill] sm:$0xff] }
  0x8c   :  { %2760 = vmatprep.subr.bf16.mxu1 %v2759_v55  ;;  %2856 = vmatprep.subr.bf16.mxu0 %v2855_v56 }
  0x93   :  { %2762 = vmatpush3.bf16.xpose.msra.mxu1 %v2759_v55  ;;  %2858 = vmatpush3.bf16.xpose.msra.mxu0 %v2855_v56 }
  0x94   :  { %2764 = vmatprep.subr.bf16.mxu1 %v2763_v30  ;;  %2860 = vmatprep.subr.bf16.mxu0 %v2859_v44 }
  0x9b   :  { %2766 = vmatpush3.bf16.xpose.msra.mxu1 %v2763_v30  ;;  %2862 = vmatpush3.bf16.xpose.msra.mxu0 %v2859_v44 }
  0x9c   :  { %2768 = vmatprep.subr.bf16.mxu1 %v2767_v3  ;;  %2864 = vmatprep.subr.bf16.mxu0 %v2863_v41 }
  0xa3   :  { %2770 = vmatpush3.bf16.xpose.msra.mxu1 %v2767_v3  ;;  %2866 = vmatpush3.bf16.xpose.msra.mxu0 %v2863_v41 }
  0xa4   :  { %2772 = vmatprep.subr.bf16.mxu1 %v3265_v54  ;;  %2868 = vmatprep.subr.bf16.mxu0 %v3190_v8 }
  0xaa   :  { %2460 = vmatmul.mubr.f32.vlgmr.msra.gmra.mrb[0].mxu1 %v3303_v5  ;;  %2628 = vmatmul.mubr.f32.vlgmr.msra.gmra.mrb[0].mxu0 %v3303_v5 }
  0xab   :  { %2774 = vmatpush3.bf16.xpose.msra.mxu1 %v3265_v54  ;;  %2870 = vmatpush3.bf16.xpose.msra.mxu0 %v3190_v8  ;;  %v3907_v8 = vld [vmem:[#allocation15_spill] sm:$0xff] }
  0xac   :  { %2776 = vmatprep.subr.bf16.mxu1 %v3275_v58  ;;  %2872 = vmatprep.subr.bf16.mxu0 %v3196_v9  ;;  %v3909_v54 = vld [vmem:[#allocation27_spill] sm:$0xff] }
  0xad   :  { %2462 = vmatprep.mubr.f32.mxu1 %v3307_v15  ;;  %2630 = vmatprep.mubr.f32.mxu0 %v3307_v15 }
  0xae   :  { %2463 = vmatmul.mubr.f32.gmra.mrb[2].mxu1 %v3316_v21  ;;  %2631 = vmatmul.mubr.f32.gmra.mrb[2].mxu0 %v3316_v21 }
  0xaf   :  { %2465 = vmatprep.mubr.f32.mxu1 %v3320_v22  ;;  %2633 = vmatprep.mubr.f32.mxu0 %v3320_v22 }
  0xb2   :  { %2466 = vmatmul.mubr.f32.gmra.mrb[4].mxu1 %v3337_v34  ;;  %2634 = vmatmul.mubr.f32.gmra.mrb[4].mxu0 %v3337_v34 }
  0xb3   :  { %2778 = vmatpush3.bf16.xpose.msra.mxu1 %v3275_v58  ;;  %2874 = vmatpush3.bf16.xpose.msra.mxu0 %v3196_v9  ;;  %v3908_v9 = vld [vmem:[#allocation11_spill] sm:$0xff]  ;;  %v3910_v58 = vld [vmem:[#allocation28_spill] sm:$0xff] }
  0xb4   :  { %2780 = vmatprep.subr.bf16.mxu1 %v3283_v62  ;;  %2876 = vmatprep.subr.bf16.mxu0 %v3210_v18 }
  0xb5   :  { %2468 = vmatprep.mubr.f32.mxu1 %v3345_v59  ;;  %2636 = vmatprep.mubr.f32.mxu0 %v3345_v59 }
  0xb6   :  { %2469 = vmatmul.mubr.f32.gmra.mrb[6].mxu1 %v3347_v60  ;;  %2637 = vmatmul.mubr.f32.gmra.mrb[6].mxu0 %v3347_v60 }
  0xb7   :  { %2471 = vmatprep.mubr.f32.mxu1 %v3357_v47  ;;  %2639 = vmatprep.mubr.f32.mxu0 %v3357_v47 }
  0xba   :  { %2472 = vmatmul.mubr.f32.gmra.mrb[8].mxu1 %v3370_v4  ;;  %2640 = vmatmul.mubr.f32.gmra.mrb[8].mxu0 %v3370_v4 }
  0xbb   :  { %2782 = vmatpush3.bf16.xpose.msra.mxu1 %v3283_v62  ;;  %2878 = vmatpush3.bf16.xpose.msra.mxu0 %v3210_v18  ;;  %v3911_v18 = vld [vmem:[#allocation16_spill] sm:$0xff] }
  0xbc   :  { %2784 = vmatprep.subr.bf16.mxu1 %v3907_v8  ;;  %2880 = vmatprep.subr.bf16.mxu0 %v3908_v9  ;;  %v3912_v62 = vld [vmem:[#allocation12_spill] sm:$0xff] }
  0xbd   :  { %2474 = vmatprep.mubr.f32.mxu1 %v3909_v54  ;;  %2642 = vmatprep.mubr.f32.mxu0 %v3909_v54 }
  0xbe   :  { %2475 = vmatmul.mubr.f32.gmra.mrb[10].mxu1 %v3910_v58  ;;  %2643 = vmatmul.mubr.f32.gmra.mrb[10].mxu0 %v3910_v58 }
  0xbf   :  { %2477 = vmatprep.mubr.f32.mxu1 %v3389_v29  ;;  %2645 = vmatprep.mubr.f32.mxu0 %v3389_v29 }
  0xc2   :  { %2478 = vmatmul.mubr.f32.gmra.mrb[12].mxu1 %v3404_v11  ;;  %2646 = vmatmul.mubr.f32.gmra.mrb[12].mxu0 %v3404_v11 }
  0xc3   :  { %2786 = vmatpush3.bf16.xpose.msra.mxu1 %v3907_v8  ;;  %2882 = vmatpush3.bf16.xpose.msra.mxu0 %v3908_v9 }
  0xc4   :  { %2788 = vmatprep.subr.bf16.mxu1 %v3911_v18  ;;  %2884 = vmatprep.subr.bf16.mxu0 %v3912_v62 }
  0xc5   :  { %2480 = vmatprep.mubr.f32.mxu1 %v3413_v63  ;;  %2648 = vmatprep.mubr.f32.mxu0 %v3413_v63 }
  0xc6   :  { %2481 = vmatmul.mubr.f32.gmra.mrb[14].mxu1 %v3420_v14  ;;  %2649 = vmatmul.mubr.f32.gmra.mrb[14].mxu0 %v3420_v14 }
  0xc7   :  { %2515 = vmatprep.mubr.f32.mxu1 %v3913_v17  ;;  %2683 = vmatprep.mubr.f32.mxu0 %v3202_v13  ;;  %v3918_v13 = vld [vmem:[#allocation21_spill] sm:$0xff] }
  0xcb   :  { %2790 = vmatpush3.bf16.xpose.msra.mxu1 %v3911_v18  ;;  %2886 = vmatpush3.bf16.xpose.msra.mxu0 %v3912_v62 }
  0xcc   :  { %2792 = vmatprep.subr.bf16.mxu1 %v3914_v19  ;;  %2888 = vmatprep.subr.bf16.mxu0 %v3915_v49 }
  0xd3   :  { %2794 = vmatpush3.bf16.xpose.msra.mxu1 %v3914_v19  ;;  %2890 = vmatpush3.bf16.xpose.msra.mxu0 %v3915_v49 }
  0xd4   :  { %2796 = vmatprep.subr.bf16.mxu1 %v3916_v24  ;;  %2892 = vmatprep.subr.bf16.mxu0 %v3917_v23 }
  0xdb   :  { %2798 = vmatpush3.bf16.xpose.msra.mxu1 %v3916_v24  ;;  %2894 = vmatpush3.bf16.xpose.msra.mxu0 %v3917_v23 }
  0xdc   :  { %2800 = vmatprep.subr.bf16.mxu1 %v3918_v13  ;;  %2896 = vmatprep.subr.bf16.mxu0 %v3919_v52 }
  0xe3   :  { %2802 = vmatpush3.bf16.xpose.msra.mxu1 %v3918_v13  ;;  %2898 = vmatpush3.bf16.xpose.msra.mxu0 %v3919_v52 }
  0xea   :  { %2516 = vmatmul.mubr.f32.vlgmr.msra.gmra.mrb[0].mxu1 %v3920_v53  ;;  %2684 = vmatmul.mubr.f32.vlgmr.msra.gmra.mrb[0].mxu0 %v3303_v5  ;;  %v3926_v5 = vld [vmem:[#allocation29_spill] sm:$0xff] }
  0xeb   :  { %2518 = vmatprep.mubr.f32.mxu1 %v3921_v16  ;;  %2686 = vmatprep.mubr.f32.mxu0 %v3307_v15 }
  0xee   :  { %2519 = vmatmul.mubr.f32.gmra.mrb[2].mxu1 %v3922_v50  ;;  %2687 = vmatmul.mubr.f32.gmra.mrb[2].mxu0 %v3316_v21 }
  0xef   :  { %2521 = vmatprep.mubr.f32.mxu1 %v3923_v26  ;;  %2689 = vmatprep.mubr.f32.mxu0 %v3320_v22 }
  0xf2   :  { %2522 = vmatmul.mubr.f32.gmra.mrb[4].mxu1 %v3924_v27  ;;  %2690 = vmatmul.mubr.f32.gmra.mrb[4].mxu0 %v3337_v34 }
  0xf3   :  { %2524 = vmatprep.mubr.f32.mxu1 %v3925_v38  ;;  %2692 = vmatprep.mubr.f32.mxu0 %v3345_v59 }
  0xf6   :  { %2525 = vmatmul.mubr.f32.gmra.mrb[6].mxu1 %v3366_v20  ;;  %2693 = vmatmul.mubr.f32.gmra.mrb[6].mxu0 %v3347_v60 }
  0xf7   :  { %2527 = vmatprep.mubr.f32.mxu1 %v3374_v35  ;;  %2695 = vmatprep.mubr.f32.mxu0 %v3357_v47  ;;  %v3134_v35 = vmov 0  }
  0xf8   :  { %2984 = vset.pattern.permute.xlu1 %v3134_v35  ;;  %2985 = vset.pattern.permute.xlu0 %v3134_v35 }
  0xfa   :  { %2528 = vmatmul.mubr.f32.gmra.mrb[8].mxu1 %v3384_v1  ;;  %2696 = vmatmul.mubr.f32.gmra.mrb[8].mxu0 %v3370_v4 }
  0xfb   :  { %2530 = vmatprep.mubr.f32.mxu1 %v3398_v40  ;;  %2698 = vmatprep.mubr.f32.mxu0 %v3909_v54 }
  0xfe   :  { %2531 = vmatmul.mubr.f32.gmra.mrb[10].mxu1 %v3926_v5  ;;  %2699 = vmatmul.mubr.f32.gmra.mrb[10].mxu0 %v3910_v58 }
  0xff   :  { %2533 = vmatprep.mubr.f32.mxu1 %v3408_v2  ;;  %2701 = vmatprep.mubr.f32.mxu0 %v3389_v29 }
 0x102   :  { %2534 = vmatmul.mubr.f32.gmra.mrb[12].mxu1 %v3418_v48  ;;  %2702 = vmatmul.mubr.f32.gmra.mrb[12].mxu0 %v3404_v11 }
 0x103   :  { %2536 = vmatprep.mubr.f32.mxu1 %v3427_v0  ;;  %2704 = vmatprep.mubr.f32.mxu0 %v3413_v63 }
 0x106   :  { %2537 = vmatmul.mubr.f32.gmra.mrb[14].mxu1 %v3434_v46  ;;  %2705 = vmatmul.mubr.f32.gmra.mrb[14].mxu0 %v3420_v14 }
 0x1bd   :  { %v2517_v4 = vpop.f32.mrb[0].mxu1  ;;  %v2685_v15 = vpop.f32.mrb[0].mxu0 }
 0x1be   :  { %v3552_v2 = vadd.f32 %v2685_v15, %v2517_v4  ;;  %v689_v20 = vpop.f32.mrb[1].mxu1  ;;  %v1299_v21 = vpop.f32.mrb[1].mxu0  ;;  %v1517_v4 = vlaneseq }
 0x1bf   :  { %v3554_v22 = vadd.f32 %v1299_v21, %v689_v20 }
 0x1c0   :  { %1411 = vmax.xlane.f32.xlu0 %v3552_v2  ;;  %v3649_v21 = vshrl.u32 %v1517_v4, 7 }
 0x1c1   :  { %v2520_v34 = vpop.f32.mrb[2].mxu1  ;;  %v2688_v59 = vpop.f32.mrb[2].mxu0 }
 0x1c2   :  { %v3557_v63 = vadd.f32 %v2688_v59, %v2520_v34  ;;  %v703_v60 = vpop.f32.mrb[3].mxu1  ;;  %v1311_v11 = vpop.f32.mrb[3].mxu0 }
 0x1c3   :  { %v3559_v47 = vadd.f32 %v1311_v11, %v703_v60 }
 0x1c4   :  { %1409 = vmax.xlane.f32.xlu0 %v3554_v22  ;;  %1415 = vmax.xlane.f32.xlu1 %v3557_v63 }
 0x1c5   :  { %v2523_v1 = vpop.f32.mrb[4].mxu1  ;;  %v2691_v29 = vpop.f32.mrb[4].mxu0 }
 0x1c6   :  { %v3563_v40 = vadd.f32 %v2691_v29, %v2523_v1  ;;  %v717_v48 = vpop.f32.mrb[5].mxu1  ;;  %v1323_v14 = vpop.f32.mrb[5].mxu0  ;;  %v1519_v29 = vadd.s32 8, %v3649_v21 }
 0x1c7   :  { %v3565_v0 = vadd.f32 %v1323_v14, %v717_v48  ;;  %v3654_v48 = vand.u32 127, %v1517_v4 }
 0x1c8   :  { %1413 = vmax.xlane.f32.xlu1 %v3559_v47 }
 0x1c9   :  { %v2694_v46 = vpop.f32.mrb[6].mxu0  ;;  %1417 = vmax.xlane.f32.xlu0 %v3565_v0  ;;  %v2526_v10 = vpop.f32.mrb[6].mxu1  ;;  %vm1556_vm0 = vcmp.ne.s32.totalorder %v1519_v29, %v3654_v48  ;;  %vm1571_vm1 = vcmp.lt.s32.totalorder %v3654_v48, 16  ;;  %vm1555_vm3 = vcmp.ne.s32.totalorder %v3649_v21, %v3654_v48 }
 0x1ca   :  { %v3569_v12 = vadd.f32 %v2694_v46, %v2526_v10  ;;  %v731_v36 = vpop.f32.mrb[7].mxu1  ;;  %v1335_v39 = vpop.f32.mrb[7].mxu0  ;;  %vm1575_vm2 = vmand %vm1556_vm0, %vm1571_vm1 }
 0x1cb   :  { %v3571_v28 = vadd.f32 %v1335_v39, %v731_v36  ;;  %vm1574_vm4 = vmand %vm1555_vm3, %vm1571_vm1 }
 0x1cc   :  { %1419 = vmax.xlane.f32.xlu1 %v3563_v40 }
 0x1cd   :  { %v2697_v37 = vpop.f32.mrb[8].mxu0  ;;  %1421 = vmax.xlane.f32.xlu0 %v3571_v28  ;;  %v2529_v6 = vpop.f32.mrb[8].mxu1 }
 0x1ce   :  { %v3575_v51 = vadd.f32 %v2697_v37, %v2529_v6  ;;  %v745_v55 = vpop.f32.mrb[9].mxu1  ;;  %v1347_v56 = vpop.f32.mrb[9].mxu0 }
 0x1cf   :  { %v3577_v42 = vadd.f32 %v1347_v56, %v745_v55 }
 0x1d0   :  { %1423 = vmax.xlane.f32.xlu1 %v3569_v12 }
 0x1d1   :  { %v2700_v32 = vpop.f32.mrb[10].mxu0  ;;  %1425 = vmax.xlane.f32.xlu0 %v3577_v42  ;;  %v2532_v43 = vpop.f32.mrb[10].mxu1 }
 0x1d2   :  { %v3581_v25 = vadd.f32 %v2700_v32, %v2532_v43  ;;  %v759_v33 = vpop.f32.mrb[11].mxu1  ;;  %v1359_v7 = vpop.f32.mrb[11].mxu0 }
 0x1d3   :  { %v3583_v30 = vadd.f32 %v1359_v7, %v759_v33 }
 0x1d4   :  { %1427 = vmax.xlane.f32.xlu1 %v3575_v51 }
 0x1d5   :  { %v2703_v44 = vpop.f32.mrb[12].mxu0  ;;  %1429 = vmax.xlane.f32.xlu0 %v3583_v30  ;;  %v2535_v31 = vpop.f32.mrb[12].mxu1 }
 0x1d6   :  { %v3587_v45 = vadd.f32 %v2703_v44, %v2535_v31  ;;  %v773_v57 = vpop.f32.mrb[13].mxu1  ;;  %v1371_v61 = vpop.f32.mrb[13].mxu0 }
 0x1d7   :  { %v3589_v3 = vadd.f32 %v1371_v61, %v773_v57 }
 0x1d8   :  { %1431 = vmax.xlane.f32.xlu1 %v3581_v25 }
 0x1d9   :  { %v2706_v41 = vpop.f32.mrb[14].mxu0  ;;  %1433 = vmax.xlane.f32.xlu0 %v3589_v3  ;;  %v2538_v8 = vpop.f32.mrb[14].mxu1 }
 0x1da   :  { %v3593_v9 = vadd.f32 %v2706_v41, %v2538_v8  ;;  %v787_v54 = vpop.f32.mrb[15].mxu1  ;;  %v1383_v58 = vpop.f32.mrb[15].mxu0  ;;  %v1522_v8 = vadd.s32 32, %v3649_v21 }
 0x1db   :  { %v3595_v18 = vadd.f32 %v1383_v58, %v787_v54 }
 0x1dc   :  { %1435 = vmax.xlane.f32.xlu1 %v3587_v45  ;;  %vm1559_vm11 = vcmp.ne.s32.totalorder %v1522_v8, %v3654_v48 }
 0x1dd   :  { %1437 = vmax.xlane.f32.xlu0 %v3595_v18  ;;  %vm1578_vm12 = vmand %vm1559_vm11, %vm1571_vm1 }
 0x1e0   :  { %1439 = vmax.xlane.f32.xlu1 %v3593_v9 }
 0x24d   :  { %v3600_v62 = vpop.xlane.xlu0 %1411 }
 0x24e   :  { %1597 = vperm.xlu1 %2984, %v3600_v62  }
 0x251   :  { %v3603_v17 = vpop.xlane.xlu0 %1409  ;;  %v3605_v19 = vpop.xlane.xlu1 %1415 }
 0x252   :  { %1607 = vperm.xlu1 %2984, %v3605_v19   ;;  %1592 = vperm.xlu0 %2985, %v3603_v17  }
 0x255   :  { %v3609_v49 = vpop.xlane.xlu1 %1413 }
 0x256   :  { %1602 = vperm.xlu1 %2984, %v3609_v49   ;;  %v3612_v24 = vpop.xlane.xlu0 %1417 }
 0x259   :  { %v3614_v23 = vpop.xlane.xlu1 %1419 }
 0x25a   :  { %1617 = vperm.xlu1 %2984, %v3614_v23   ;;  %v3617_v13 = vpop.xlane.xlu0 %1421 }
 0x25d   :  { %v3619_v52 = vpop.xlane.xlu1 %1423 }
 0x25e   :  { %1612 = vperm.xlu1 %2984, %v3612_v24   ;;  %v3626_v16 = vpop.xlane.xlu0 %1425 }
 0x261   :  { %v3622_v53 = vpop.xlane.xlu1 %1427 }
 0x262   :  { %1627 = vperm.xlu1 %2984, %v3619_v52   ;;  %1637 = vperm.xlu0 %2985, %v3622_v53   ;;  %v3632_v26 = vpop.xlane.xlu0 %1429 }
 0x265   :  { %v3628_v50 = vpop.xlane.xlu1 %1431 }
 0x266   :  { %1622 = vperm.xlu1 %2984, %v3617_v13   ;;  %1647 = vperm.xlu0 %2985, %v3628_v50   ;;  %v3642_v5 = vpop.xlane.xlu0 %1433 }
 0x269   :  { %v3634_v27 = vpop.xlane.xlu1 %1435 }
 0x26a   :  { %1632 = vperm.xlu1 %2984, %v3626_v16   ;;  %1657 = vperm.xlu0 %2985, %v3634_v27   ;;  %v3645_v35 = vpop.xlane.xlu0 %1437 }
 0x26d   :  { %v3638_v38 = vpop.xlane.xlu1 %1439 }
 0x26e   :  { %1642 = vperm.xlu1 %2984, %v3632_v26   ;;  %1667 = vperm.xlu0 %2985, %v3638_v38  }
 0x272   :  { %1652 = vperm.xlu1 %2984, %v3642_v5  }
 0x276   :  { %1662 = vperm.xlu1 %2984, %v3645_v35  }
 0x2cd   :  { %v1598_v15 = vpop.permute.xlu1 %1597 }
 0x2ce   :  { %v1671_v20 = vsub.f32 %v3552_v2, %v1598_v15 }
 0x2d0   :  { %v1688_v34 = vmul.f32 1.442695, %v1671_v20 }
 0x2d1   :  { %v1608_v59 = vpop.permute.xlu1 %1607  ;;  %v1593_v60 = vpop.permute.xlu0 %1592 }
 0x2d2   :  { %2986 = vpow2.f32 %v1688_v34  ;;  %v1673_v11 = vsub.f32 %v3557_v63, %v1608_v59  ;;  %v1670_v1 = vsub.f32 %v3554_v22, %v1593_v60  ;;  %v1520_v63 = vadd.s32 16, %v3649_v21 }
 0x2d4   :  { %v1686_v14 = vmul.f32 1.442695, %v1670_v1  ;;  %v1692_v46 = vmul.f32 1.442695, %v1673_v11  ;;  %vm1557_vm5 = vcmp.ne.s32.totalorder %v1520_v63, %v3654_v48  ;;  %v1525_v11 = vadd.s32 56, %v3649_v21 }
 0x2d5   :  { %v1603_v10 = vpop.permute.xlu1 %1602  ;;  %vm1576_vm7 = vmand %vm1557_vm5, %vm1571_vm1 }
 0x2d6   :  { %v1672_v36 = vsub.f32 %v3559_v47, %v1603_v10  ;;  %2988 = vpow2.f32 %v1686_v14  ;;  %v1521_v47 = vadd.s32 24, %v3649_v21  ;;  %v1527_v10 = vadd.s32 72, %v3649_v21 }
 0x2d7   :  { %2990 = vpow2.f32 %v1692_v46  ;;  %vm1562_vm13 = vcmp.ne.s32.totalorder %v1525_v11, %v3654_v48  ;;  %v1532_v11 = vadd.s32 112, %v3649_v21 }
 0x2d8   :  { %v1690_v2 = vmul.f32 1.442695, %v1672_v36  ;;  %vm1558_vm6 = vcmp.ne.s32.totalorder %v1521_v47, %v3654_v48  ;;  %vm1564_vm14 = vcmp.ne.s32.totalorder %v1527_v10, %v3654_v48  ;;  %vm1581_vm15 = vmand %vm1562_vm13, %vm1571_vm1 }
 0x2d9   :  { %v1618_v39 = vpop.permute.xlu1 %1617  ;;  %vm3678_vm8 = vmand %vm1558_vm6, %vm1571_vm1 }
 0x2da   :  { %2992 = vpow2.f32 %v1690_v2  ;;  %v1675_v22 = vsub.f32 %v3563_v40, %v1618_v39  ;;  %v1523_v40 = vadd.s32 40, %v3649_v21  ;;  %v1524_v39 = vadd.s32 48, %v3649_v21 }
 0x2dc   :  { %v2987_v37 = vpop.eup %2986  ;;  %v1696_v6 = vmul.f32 1.442695, %v1675_v22  ;;  %vm1560_vm9 = vcmp.ne.s32.totalorder %v1523_v40, %v3654_v48  ;;  %vm1561_vm0 = vcmp.ne.s32.totalorder %v1524_v39, %v3654_v48 }
 0x2dd   :  { %v1613_v55 = vpop.permute.xlu1 %1612  ;;  %v1719_v56 = vsel %vm1575_vm2, %v2987_v37, 0.0  ;;  %vm3690_vm10 = vmand %vm1560_vm9, %vm1571_vm1 }
 0x2de   :  { %2994 = vpow2.f32 %v1696_v6  ;;  %v1674_v32 = vsub.f32 %v3565_v0, %v1613_v55  ;;  %1768 = vadd.xlane.f32.xlu0 %v1719_v56  ;;  %v1529_v56 = vadd.s32 88, %v3649_v21  ;;  %vm3717_vm2 = vmand %vm1564_vm14, %vm1571_vm1 }
 0x2df   :  { %vm1580_vm3 = vmand %vm1561_vm0, %vm1571_vm1  ;;  %vm1569_vm0 = vcmp.ne.s32.totalorder %v1532_v11, %v3654_v48 }
 0x2e0   :  { %v1694_v43 = vmul.f32 1.442695, %v1674_v32  ;;  %v2989_v33 = vpop.eup %2988  ;;  %v1526_v32 = vadd.s32 64, %v3649_v21 }
 0x2e1   :  { %v1628_v7 = vpop.permute.xlu1 %1627  ;;  %v1638_v44 = vpop.permute.xlu0 %1637  ;;  %v1718_v0 = vsel %vm1574_vm4, %v2989_v33, 0.0  ;;  %vm1566_vm4 = vcmp.ne.s32.totalorder %v1529_v56, %v3654_v48 }
 0x2e2   :  { %2996 = vpow2.f32 %v1694_v43  ;;  %v1677_v31 = vsub.f32 %v3569_v12, %v1628_v7  ;;  %v1679_v57 = vsub.f32 %v3575_v51, %v1638_v44  ;;  %v2991_v61 = vpop.eup %2990  ;;  %1766 = vadd.xlane.f32.xlu1 %v1718_v0  ;;  %vm1563_vm5 = vcmp.ne.s32.totalorder %v1526_v32, %v3654_v48  ;;  %vm3732_vm6 = vmand %vm1566_vm4, %vm1571_vm1 }
 0x2e3   :  { %v1721_v59 = vsel %vm3678_vm8, %v2991_v61, 0.0  ;;  %v1528_v0 = vadd.s32 80, %v3649_v21 }
 0x2e4   :  { %v2993_v54 = vpop.eup %2992  ;;  %v1700_v12 = vmul.f32 1.442695, %v1677_v31  ;;  %v1704_v58 = vmul.f32 1.442695, %v1679_v57  ;;  %v1531_v57 = vadd.s32 104, %v3649_v21 }
 0x2e5   :  { %v1623_v51 = vpop.permute.xlu1 %1622  ;;  %v1648_v4 = vpop.permute.xlu0 %1647  ;;  %v1720_v15 = vsel %vm1576_vm7, %v2993_v54, 0.0  ;;  %vm1582_vm7 = vmand %vm1563_vm5, %vm1571_vm1  ;;  %vm1565_vm9 = vcmp.ne.s32.totalorder %v1528_v0, %v3654_v48 }
 0x2e6   :  { %2998 = vpow2.f32 %v1700_v12  ;;  %v1676_v20 = vsub.f32 %v3571_v28, %v1623_v51  ;;  %v1681_v34 = vsub.f32 %v3581_v25, %v1648_v4  ;;  %1770 = vadd.xlane.f32.xlu0 %v1720_v15  ;;  %1772 = vadd.xlane.f32.xlu1 %v1721_v59  ;;  %vm1568_vm8 = vcmp.ne.s32.totalorder %v1531_v57, %v3654_v48  ;;  %vm1584_vm11 = vmand %vm1565_vm9, %vm1571_vm1 }
 0x2e7   :  { %3000 = vpow2.f32 %v1704_v58  ;;  %v1533_v4 = vadd.s32 120, %v3649_v21  ;;  %v1530_v15 = vadd.s32 96, %v3649_v21  ;;  %v1466_v57 = vsub.f32 -inf, %v3622_v53 }
 0x2e8   :  { %v2995_v1 = vpop.eup %2994  ;;  %v1698_v28 = vmul.f32 1.442695, %v1676_v20  ;;  %v1708_v29 = vmul.f32 1.442695, %v1681_v34 }
 0x2e9   :  { %v1633_v25 = vpop.permute.xlu1 %1632  ;;  %v1658_v14 = vpop.permute.xlu0 %1657  ;;  %v1723_v46 = vsel %vm3690_vm10, %v2995_v1, 0.0  ;;  %vm1587_vm10 = vmand %vm1568_vm8, %vm1571_vm1  ;;  %vm1567_vm13 = vcmp.ne.s32.totalorder %v1530_v15, %v3654_v48 }
 0x2ea   :  { %3002 = vpow2.f32 %v1698_v28  ;;  %v1678_v36 = vsub.f32 %v3577_v42, %v1633_v25  ;;  %v1683_v2 = vsub.f32 %v3587_v45, %v1658_v14  ;;  %1776 = vadd.xlane.f32.xlu1 %v1723_v46 }
 0x2eb   :  { %3004 = vpow2.f32 %v1708_v29 }
 0x2ec   :  { %v2997_v22 = vpop.eup %2996  ;;  %v1702_v63 = vmul.f32 1.442695, %v1678_v36  ;;  %v1712_v37 = vmul.f32 1.442695, %v1683_v2  ;;  %v1458_v2 = vsub.f32 -inf, %v3600_v62 }
 0x2ed   :  { %v1643_v6 = vpop.permute.xlu1 %1642  ;;  %v1668_v47 = vpop.permute.xlu0 %1667  ;;  %v1722_v55 = vsel %vm1578_vm12, %v2997_v22, 0.0  ;;  %vm1570_vm12 = vcmp.ne.s32.totalorder %v1533_v4, %v3654_v48  ;;  %v1457_v22 = vsub.f32 -inf, %v3603_v17  ;;  %v1462_v48 = vsub.f32 -inf, %v3614_v23 }
 0x2ee   :  { %3006 = vpow2.f32 %v1702_v63  ;;  %v1680_v42 = vsub.f32 %v3583_v30, %v1643_v6  ;;  %v1685_v45 = vsub.f32 %v3593_v9, %v1668_v47  ;;  %1774 = vadd.xlane.f32.xlu0 %v1722_v55  ;;  %vm1589_vm14 = vmand %vm1570_vm12, %vm1571_vm1  ;;  %v1475_v39 = vmul.f32 1.442695, %v1458_v2 }
 0x2ef   :  { %3008 = vpow2.f32 %v1712_v37  ;;  %v1459_v63 = vsub.f32 -inf, %v3609_v49  ;;  %v1473_v37 = vmul.f32 1.442695, %v1457_v22  ;;  %v1460_v6 = vsub.f32 -inf, %v3605_v19 }
 0x2f0   :  { %v2999_v40 = vpop.eup %2998  ;;  %v1706_v43 = vmul.f32 1.442695, %v1680_v42  ;;  %v1716_v33 = vmul.f32 1.442695, %v1685_v45  ;;  %v1461_v42 = vsub.f32 -inf, %v3612_v24  ;;  %v1465_v30 = vsub.f32 -inf, %v3626_v16 }
 0x2f1   :  { %v1653_v7 = vpop.permute.xlu1 %1652  ;;  %v1725_v44 = vsel %vm1581_vm15, %v2999_v40, 0.0  ;;  %v3001_v9 = vpop.eup %3000  ;;  %vm1586_vm15 = vmand %vm1567_vm13, %vm1571_vm1  ;;  %v1477_v47 = vmul.f32 1.442695, %v1459_v63  ;;  %v1479_v55 = vmul.f32 1.442695, %v1460_v6  ;;  %v1464_v40 = vsub.f32 -inf, %v3619_v52 }
 0x2f2   :  { %3010 = vpow2.f32 %v1706_v43  ;;  %v1682_v31 = vsub.f32 %v3589_v3, %v1653_v7  ;;  %1780 = vadd.xlane.f32.xlu1 %v1725_v44  ;;  %v1727_v3 = vsel %vm3717_vm2, %v3001_v9, 0.0  ;;  %vm1588_vm2 = vmand %vm1569_vm0, %vm1571_vm1  ;;  %v1483_v45 = vmul.f32 1.442695, %v1462_v48 }
 0x2f3   :  { %3012 = vpow2.f32 %v1716_v33  ;;  %v1481_v32 = vmul.f32 1.442695, %v1461_v42  ;;  %v1463_v43 = vsub.f32 -inf, %v3617_v13  ;;  %v1472_v2 = vsub.f32 -inf, %v3638_v38 }
 0x2f4   :  { %v3003_v61 = vpop.eup %3002  ;;  %v1710_v41 = vmul.f32 1.442695, %v1682_v31  ;;  %v1487_v31 = vmul.f32 1.442695, %v1464_v40  ;;  %vm2156_vm1 = vcmask 7168  }
 0x2f5   :  { %v1663_v8 = vpop.permute.xlu1 %1662  ;;  %v1724_v54 = vsel %vm1580_vm3, %v3003_v61, 0.0  ;;  %v3005_v58 = vpop.eup %3004  ;;  %v1485_v0 = vmul.f32 1.442695, %v1463_v43 }
 0x2f6   :  { %3014 = vpow2.f32 %v1710_v41  ;;  %v1684_v51 = vsub.f32 %v3595_v18, %v1663_v8  ;;  %1778 = vadd.xlane.f32.xlu0 %v1724_v54  ;;  %1784 = vadd.xlane.f32.xlu1 %v1727_v3  ;;  %v1729_v60 = vsel %vm3732_vm6, %v3005_v58, 0.0  ;;  %v1489_v54 = vmul.f32 1.442695, %v1465_v30 }
 0x2f7   :  { %v1468_v3 = vsub.f32 -inf, %v3628_v50  ;;  %v1491_v58 = vmul.f32 1.442695, %v1466_v57 }
 0x2f8   :  { %v3007_v20 = vpop.eup %3006  ;;  %v1714_v34 = vmul.f32 1.442695, %v1684_v51 }
 0x2f9   :  { %v1726_v59 = vsel %vm1582_vm7, %v3007_v20, 0.0  ;;  %v3009_v18 = vpop.eup %3008 }
 0x2fa   :  { %3016 = vpow2.f32 %v1714_v34  ;;  %1782 = vadd.xlane.f32.xlu0 %v1726_v59  ;;  %1788 = vadd.xlane.f32.xlu1 %v1729_v60  ;;  %v1731_v29 = vsel %vm1587_vm10, %v3009_v18, 0.0  ;;  %v1467_v59 = vsub.f32 -inf, %v3632_v26  ;;  %v1495_v60 = vmul.f32 1.442695, %v1468_v3 }
 0x2fb   :  { %3018 = vpow2.f32 %v1475_v39 }
 0x2fc   :  { %v3011_v1 = vpop.eup %3010  ;;  %3020 = vpow2.f32 %v1473_v37 }
 0x2fd   :  { %v1728_v28 = vsel %vm1584_vm11, %v3011_v1, 0.0  ;;  %v3013_v25 = vpop.eup %3012  ;;  %3022 = vpow2.f32 %v1477_v47  ;;  %v1470_v1 = vsub.f32 -inf, %v3634_v27 }
 0x2fe   :  { %1786 = vadd.xlane.f32.xlu0 %v1728_v28  ;;  %1792 = vadd.xlane.f32.xlu1 %v1731_v29  ;;  %v1733_v10 = vsel %vm1589_vm14, %v3013_v25, 0.0  ;;  %3024 = vpow2.f32 %v1479_v55 }
 0x2ff   :  { %3026 = vpow2.f32 %v1483_v45 }
 0x300   :  { %v3015_v14 = vpop.eup %3014  ;;  %3028 = vpow2.f32 %v1481_v32  ;;  %v1503_v32 = vmul.f32 1.442695, %v1472_v2 }
 0x301   :  { %v1730_v46 = vsel %vm1586_vm15, %v3015_v14, 0.0 }
 0x302   :  { %1790 = vadd.xlane.f32.xlu0 %v1730_v46  ;;  %1796 = vadd.xlane.f32.xlu1 %v1733_v10  ;;  %v1493_v46 = vmul.f32 1.442695, %v1467_v59  ;;  %v1469_v10 = vsub.f32 -inf, %v3642_v5 }
 0x304   :  { %v3017_v21 = vpop.eup %3016  ;;  %v1497_v48 = vmul.f32 1.442695, %v1469_v10 }
 0x305   :  { %v1732_v36 = vsel %vm1588_vm2, %v3017_v21, 0.0  ;;  %v3019_v56 = vpop.eup %3018 }
 0x306   :  { %1794 = vadd.xlane.f32.xlu0 %v1732_v36  ;;  %v1751_v33 = vmul.f32 0.0, %v3019_v56  ;;  %v3021_v44 = vpop.eup %3020  ;;  %v1499_v36 = vmul.f32 1.442695, %v1470_v1  ;;  %v1471_v56 = vsub.f32 -inf, %v3645_v35 }
 0x307   :  { %v3023_v61 = vpop.eup %3022  ;;  %v1750_v41 = vmul.f32 0.0, %v3021_v44 }
 0x308   :  { %v3025_v8 = vpop.eup %3024  ;;  %v1752_v4 = vmul.f32 0.0, %v3023_v61  ;;  %v1501_v57 = vmul.f32 1.442695, %v1471_v56 }
 0x309   :  { %v1753_v15 = vmul.f32 0.0, %v3025_v8  ;;  %v3027_v34 = vpop.eup %3026 }
 0x30a   :  { %v3029_v29 = vpop.eup %3028  ;;  %v1755_v25 = vmul.f32 0.0, %v3027_v34 }
 0x30b   :  { %v1754_v63 = vmul.f32 0.0, %v3029_v29 }
 0x36b   :  { %v1769_v7 = vpop.xlane.xlu0 %1768 }
 0x36c   :  { %v1799_v9 = vadd.f32 %v1769_v7, %v1751_v33 }
 0x36e   :  { %3030 = vlog2.f32 %v1799_v9 }
 0x36f   :  { %v1767_v12 = vpop.xlane.xlu1 %1766  ;;  %3032 = vpow2.f32 %v1487_v31 }
 0x370   :  { %v1798_v51 = vadd.f32 %v1767_v12, %v1750_v41  ;;  %3034 = vpow2.f32 %v1485_v0 }
 0x372   :  { %3036 = vlog2.f32 %v1798_v51 }
 0x373   :  { %v1771_v20 = vpop.xlane.xlu0 %1770  ;;  %3038 = vpow2.f32 %v1489_v54  ;;  %v1773_v18 = vpop.xlane.xlu1 %1772 }
 0x374   :  { %v1800_v11 = vadd.f32 %v1771_v20, %v1752_v4  ;;  %3040 = vpow2.f32 %v1491_v58  ;;  %v1801_v28 = vadd.f32 %v1773_v18, %v1753_v15 }
 0x376   :  { %3042 = vlog2.f32 %v1800_v11 }
 0x377   :  { %3044 = vlog2.f32 %v1801_v28  ;;  %v1777_v21 = vpop.xlane.xlu1 %1776 }
 0x378   :  { %v3031_v14 = vpop.eup %3030  ;;  %3046 = vpow2.f32 %v1495_v60  ;;  %v1803_v22 = vadd.f32 %v1777_v21, %v1755_v25 }
 0x379   :  { %v2111_v39 = vmul.f32 0.6931472, %v3031_v14  ;;  %v3033_v37 = vpop.eup %3032 }
 0x37a   :  { %3048 = vlog2.f32 %v1803_v22  ;;  %v3035_v55 = vpop.eup %3034 }
 0x37b   :  { %v2141_v6 = vadd.f32 %v2111_v39, %v3600_v62  ;;  %v1775_v47 = vpop.xlane.xlu0 %1774  ;;  %3050 = vpow2.f32 %v1493_v46  ;;  %v1757_v62 = vmul.f32 0.0, %v3033_v37  ;;  %v1756_v54 = vmul.f32 0.0, %v3035_v55 }
 0x37c   :  { %v1802_v42 = vadd.f32 %v1775_v47, %v1754_v63  ;;  %v3037_v45 = vpop.eup %3036  ;;  %3052 = vpow2.f32 %v1499_v36 }
 0x37d   :  { %2158 = vst.msk [vmem:[%s3857_s2 + $0x8] sm:$0xff] %vm2156_vm1, %v2141_v6  ;;  %v3039_v40 = vpop.eup %3038  ;;  %v2109_v43 = vmul.f32 0.6931472, %v3037_v45 }
 0x37e   :  { %3054 = vlog2.f32 %v1802_v42  ;;  %v3041_v33 = vpop.eup %3040  ;;  %v1758_v59 = vmul.f32 0.0, %v3039_v40 }
 0x37f   :  { %v1781_v7 = vpop.xlane.xlu1 %1780  ;;  %3056 = vpow2.f32 %v1497_v48  ;;  %v2140_v30 = vadd.f32 %v2109_v43, %v3603_v17  ;;  %v1759_v8 = vmul.f32 0.0, %v3041_v33 }
 0x380   :  { %v3043_v44 = vpop.eup %3042  ;;  %v1805_v9 = vadd.f32 %v1781_v7, %v1757_v62  ;;  %3058 = vpow2.f32 %v1503_v32 }
 0x381   :  { %v3045_v31 = vpop.eup %3044  ;;  %v2113_v0 = vmul.f32 0.6931472, %v3043_v44  ;;  %2157 = vst.msk [vmem:[%s3857_s2] sm:$0xff] %vm2156_vm1, %v2140_v30 }
 0x382   :  { %v3047_v61 = vpop.eup %3046  ;;  %v2115_v41 = vmul.f32 0.6931472, %v3045_v31  ;;  %3060 = vlog2.f32 %v1805_v9 }
 0x383   :  { %v2142_v3 = vadd.f32 %v2113_v0, %v3609_v49  ;;  %v1785_v12 = vpop.xlane.xlu1 %1784  ;;  %v1779_v58 = vpop.xlane.xlu0 %1778  ;;  %3062 = vpow2.f32 %v1501_v57  ;;  %v1761_v34 = vmul.f32 0.0, %v3047_v61 }
 0x384   :  { %v2143_v17 = vadd.f32 %v2115_v41, %v3605_v19  ;;  %v1807_v51 = vadd.f32 %v1785_v12, %v1759_v8  ;;  %v1804_v4 = vadd.f32 %v1779_v58, %v1756_v54  ;;  %v3049_v15 = vpop.eup %3048 }
 0x385   :  { %2159 = vst.msk [vmem:[%s3857_s2 + $0x10] sm:$0xff] %vm2156_vm1, %v2142_v3  ;;  %v3051_v20 = vpop.eup %3050  ;;  %v2119_v49 = vmul.f32 0.6931472, %v3049_v15 }
 0x386   :  { %2160 = vst.msk [vmem:[%s3857_s2 + $0x18] sm:$0xff] %vm2156_vm1, %v2143_v17  ;;  %3064 = vlog2.f32 %v1807_v51  ;;  %v3053_v19 = vpop.eup %3052  ;;  %v1760_v10 = vmul.f32 0.0, %v3051_v20 }
 0x387   :  { %3066 = vlog2.f32 %v1804_v4  ;;  %v1789_v60 = vpop.xlane.xlu1 %1788  ;;  %v1783_v18 = vpop.xlane.xlu0 %1782  ;;  %v2145_v1 = vadd.f32 %v2119_v49, %v3614_v23  ;;  %v1763_v46 = vmul.f32 0.0, %v3053_v19 }
 0x388   :  { %v3055_v11 = vpop.eup %3054  ;;  %v1809_v28 = vadd.f32 %v1789_v60, %v1761_v34  ;;  %v1806_v29 = vadd.f32 %v1783_v18, %v1758_v59 }
 0x389   :  { %v2117_v25 = vmul.f32 0.6931472, %v3055_v11  ;;  %v3057_v14 = vpop.eup %3056  ;;  %2162 = vst.msk [vmem:[%s3857_s2 + $0x28] sm:$0xff] %vm2156_vm1, %v2145_v1 }
 0x38a   :  { %3068 = vlog2.f32 %v1809_v28  ;;  %v3059_v21 = vpop.eup %3058  ;;  %v1762_v47 = vmul.f32 0.0, %v3057_v14 }
 0x38b   :  { %v2144_v36 = vadd.f32 %v2117_v25, %v3612_v24  ;;  %3070 = vlog2.f32 %v1806_v29  ;;  %v1793_v2 = vpop.xlane.xlu1 %1792  ;;  %v1787_v39 = vpop.xlane.xlu0 %1786  ;;  %v1765_v6 = vmul.f32 0.0, %v3059_v21 }
 0x38c   :  { %v3061_v22 = vpop.eup %3060  ;;  %v1811_v23 = vadd.f32 %v1793_v2, %v1763_v46  ;;  %v1808_v63 = vadd.f32 %v1787_v39, %v1760_v10 }
 0x38d   :  { %2161 = vst.msk [vmem:[%s3857_s2 + $0x20] sm:$0xff] %vm2156_vm1, %v2144_v36  ;;  %v2123_v37 = vmul.f32 0.6931472, %v3061_v22  ;;  %v3063_v55 = vpop.eup %3062 }
 0x38e   :  { %3072 = vlog2.f32 %v1811_v23  ;;  %v1764_v33 = vmul.f32 0.0, %v3063_v55 }
 0x38f   :  { %v2147_v48 = vadd.f32 %v2123_v37, %v3619_v52  ;;  %3074 = vlog2.f32 %v1808_v63  ;;  %v1797_v24 = vpop.xlane.xlu1 %1796  ;;  %v1791_v42 = vpop.xlane.xlu0 %1790 }
 0x390   :  { %v3065_v45 = vpop.eup %3064  ;;  %v1813_v56 = vadd.f32 %v1797_v24, %v1765_v6  ;;  %v1810_v32 = vadd.f32 %v1791_v42, %v1762_v47 }
 0x391   :  { %v3067_v40 = vpop.eup %3066  ;;  %2164 = vst.msk [vmem:[%s3857_s2 + $0x38] sm:$0xff] %vm2156_vm1, %v2147_v48  ;;  %v2127_v43 = vmul.f32 0.6931472, %v3065_v45 }
 0x392   :  { %v2121_v62 = vmul.f32 0.6931472, %v3067_v40  ;;  %3076 = vlog2.f32 %v1813_v56 }
 0x393   :  { %v2149_v7 = vadd.f32 %v2127_v43, %v3622_v53  ;;  %3078 = vlog2.f32 %v1810_v32  ;;  %v1795_v52 = vpop.xlane.xlu0 %1794 }
 0x394   :  { %v3069_v44 = vpop.eup %3068  ;;  %v2146_v30 = vadd.f32 %v2121_v62, %v3617_v13  ;;  %v1812_v9 = vadd.f32 %v1795_v52, %v1764_v33 }
 0x395   :  { %v3071_v31 = vpop.eup %3070  ;;  %2166 = vst.msk [vmem:[%s3857_s2 + $0x48] sm:$0xff] %vm2156_vm1, %v2149_v7  ;;  %v2131_v57 = vmul.f32 0.6931472, %v3069_v44 }
 0x396   :  { %2163 = vst.msk [vmem:[%s3857_s2 + $0x30] sm:$0xff] %vm2156_vm1, %v2146_v30  ;;  %v2125_v0 = vmul.f32 0.6931472, %v3071_v31  ;;  %3080 = vlog2.f32 %v1812_v9 }
 0x397   :  { %v2151_v53 = vadd.f32 %v2131_v57, %v3628_v50 }
 0x398   :  { %v3073_v61 = vpop.eup %3072  ;;  %v2148_v13 = vadd.f32 %v2125_v0, %v3626_v16 }
 0x399   :  { %v3075_v41 = vpop.eup %3074  ;;  %2168 = vst.msk [vmem:[%s3857_s2 + $0x58] sm:$0xff] %vm2156_vm1, %v2151_v53  ;;  %v2135_v8 = vmul.f32 0.6931472, %v3073_v61 }
 0x39a   :  { %2165 = vst.msk [vmem:[%s3857_s2 + $0x40] sm:$0xff] %vm2156_vm1, %v2148_v13  ;;  %v2129_v54 = vmul.f32 0.6931472, %v3075_v41 }
 0x39b   :  { %v2153_v3 = vadd.f32 %v2135_v8, %v3634_v27 }
 0x39c   :  { %v3077_v12 = vpop.eup %3076  ;;  %v2150_v50 = vadd.f32 %v2129_v54, %v3632_v26 }
 0x39d   :  { %v3079_v58 = vpop.eup %3078  ;;  %2170 = vst.msk [vmem:[%s3857_s2 + $0x68] sm:$0xff] %vm2156_vm1, %v2153_v3  ;;  %v2139_v16 = vmul.f32 0.6931472, %v3077_v12 }
 0x39e   :  { %2167 = vst.msk [vmem:[%s3857_s2 + $0x50] sm:$0xff] %vm2156_vm1, %v2150_v50  ;;  %v2133_v17 = vmul.f32 0.6931472, %v3079_v58 }
 0x39f   :  { %v2155_v51 = vadd.f32 %v2139_v16, %v3638_v38 }
 0x3a0   :  { %v3081_v4 = vpop.eup %3080  ;;  %v2152_v27 = vadd.f32 %v2133_v17, %v3642_v5 }
 0x3a1   :  { %2172 = vst.msk [vmem:[%s3857_s2 + $0x78] sm:$0xff] %vm2156_vm1, %v2155_v51  ;;  %v2137_v26 = vmul.f32 0.6931472, %v3081_v4 }
 0x3a2   :  { %2169 = vst.msk [vmem:[%s3857_s2 + $0x60] sm:$0xff] %vm2156_vm1, %v2152_v27 }
 0x3a3   :  { %v2154_v15 = vadd.f32 %v2137_v26, %v3645_v35 }
 0x3a5   :  { %2171 = vst.msk [vmem:[%s3857_s2 + $0x70] sm:$0xff] %vm2156_vm1, %v2154_v15 }
 0x3a6   :  { %2177 = vsyncpa [#allocation5], 1 }
 0x3a7   :  { %2178 = vsyncpa [#allocation7], 1 }

</bundles_post_ra>
